<compile_context>
chip_gen: v5e
topology: v5e:2x2
jax: 0.10.0
libtpu: 0.0.40
codegen_flags: <defaults>
</compile_context>

<pallas_src>
import functools

import jax
import jax.numpy as jnp
import numpy as np
from jax.experimental import pallas as pl
from jax.experimental.pallas import tpu as pltpu


# ----------------------------------------------------------------------------
# Pallas kernel: multibox loss hot path for one block of `bb` images
# (all blocks have priors on the lane axis)
# ----------------------------------------------------------------------------
def _multibox_loss_kernel(locp_ref, loct_ref, conf_ref, conft_ref, pos_ref,
                          out_ref, *, negpos_ratio):
    bb, num_cls, num_priors = conf_ref.shape

    conf = conf_ref[...].astype(jnp.float32)                   # (bb, C, P)
    conf_t = conft_ref[...]                                     # (bb, 1, P) int32
    pos = pos_ref[...] > 0.5                                    # (bb, 1, P) bool
    posf = pos.astype(jnp.float32)

    # ---- localization loss: Smooth-L1 over positive priors ------------------
    d = locp_ref[...].astype(jnp.float32) - loct_ref[...].astype(jnp.float32)
    ad = jnp.abs(d)
    sl1 = jnp.where(ad < 1.0, 0.5 * d * d, ad - 0.5)            # (bb, 4, P)
    sl1_row = jnp.sum(sl1, axis=1, keepdims=True) * posf        # (bb, 1, P)
    loss_l = jnp.sum(jnp.sum(sl1_row, axis=2, keepdims=True),
                     axis=0, keepdims=True)                     # (1, 1, 1)

    # ---- per-prior CE term: log_sum_exp(conf) - conf[target] ----------------
    m = jnp.max(conf, axis=1, keepdims=True)                    # (bb, 1, P)
    lse = jnp.log(jnp.sum(jnp.exp(conf - m), axis=1, keepdims=True)) + m
    cls_iota = jax.lax.broadcasted_iota(jnp.int32, (bb, num_cls, num_priors), 1)
    gathered = jnp.sum(jnp.where(cls_iota == conf_t, conf, 0.0),
                       axis=1, keepdims=True)                   # (bb, 1, P)
    lc_all = lse - gathered                                     # (bb, 1, P)
    # clamp: rounding can make (lse - gathered) tiny-negative; the bit-pattern
    # search below needs non-negative floats for monotone int ordering.
    lc_masked = jnp.maximum(jnp.where(pos, 0.0, lc_all), 0.0)   # positives -> 0

    # ---- hard negative mining -----------------------------------------------
    # loss_c = sum_{pos} lc_all + (sum of the top-num_neg values of lc_masked).
    # The top-k sum is tie-exact given the k-th largest value `tau`:
    #     topk = sum_{v > tau} v + (k - count(v > tau)) * tau
    # tau's f32 bit pattern is built greedily 2 bits at a time (MSB->LSB):
    # 16 dependent steps, 3 independent lane-reduce counts per step.
    num_pos = jnp.sum(posf, axis=2, keepdims=True)                       # (bb,1,1)
    num_neg = jnp.minimum(negpos_ratio * num_pos.astype(jnp.int32),
                          num_priors - 1)                                # (bb,1,1)

    v_bits = pltpu.bitcast(lc_masked, jnp.int32)                         # (bb,1,P)

    def count_ge(c):                                                     # (bb,1,1)
        return jnp.sum((v_bits >= c).astype(jnp.int32), axis=2, keepdims=True)

    res = jnp.zeros_like(num_neg)                                        # (bb,1,1)
    for shift in range(29, 0, -2):              # bits 30..1, two per step
        c1 = res | (1 << shift)
        c2 = res | (2 << shift)
        c3 = res | (3 << shift)
        f1 = count_ge(c1) >= num_neg
        f2 = count_ge(c2) >= num_neg
        f3 = count_ge(c3) >= num_neg
        res = jnp.where(f3, c3, jnp.where(f2, c2, jnp.where(f1, c1, res)))
    c1 = res | 1                                # bit 0
    res = jnp.where(count_ge(c1) >= num_neg, c1, res)
    tau = pltpu.bitcast(res, jnp.float32)       # (bb,1,1) = k-th largest value

    gt = lc_masked > tau
    sum_gt = jnp.sum(jnp.where(gt, lc_masked, 0.0), axis=2, keepdims=True)
    cnt_gt = jnp.sum(gt.astype(jnp.float32), axis=2, keepdims=True)
    topk = sum_gt + (num_neg.astype(jnp.float32) - cnt_gt) * tau
    topk = jnp.where(num_neg > 0, topk, 0.0)                             # (bb,1,1)

    pos_ce = jnp.sum(jnp.where(pos, lc_all, 0.0), axis=2, keepdims=True)
    loss_c = jnp.sum(pos_ce + topk, axis=0, keepdims=True)               # (1,1,1)
    n_pos = jnp.sum(num_pos, axis=0, keepdims=True)                      # (1,1,1)

    # single fused (1,1,3) write per step: [loss_l, loss_c, num_pos]
    lane_iota = jax.lax.broadcasted_iota(jnp.int32, (1, 1, 3), 2)
    out_ref[...] = jnp.where(lane_iota == 0, loss_l,
                             jnp.where(lane_iota == 1, loss_c, n_pos))


def multibox_loss_pallas(loc_data, conf_data, loc_t, conf_t, pos_mask,
                         negpos_ratio):
    """loc_data (B,P,4), conf_data (B,P,C), loc_t (B,P,4), conf_t (B,P) int,
    pos_mask (B,P) bool.  Returns (loss_l, loss_c) scalars."""
    B, P, C = conf_data.shape

    # Fused positive mask (conf_t > 0 & mask) and class targets, priors last.
    pos_f = jnp.logical_and(conf_t > 0, pos_mask).astype(jnp.float32)[:, None, :]
    conf_t_i = conf_t.astype(jnp.int32)[:, None, :]             # (B, 1, P)

    # Prior axis on lanes (one extra HBM pass for conf/loc, paid back by
    # lane-dense compute and 5-100x smaller VMEM tiles).
    loc_p_t = jnp.transpose(loc_data, (0, 2, 1))                # (B, 4, P)
    loc_t_t = jnp.transpose(loc_t, (0, 2, 1))                   # (B, 4, P)
    conf_tr = jnp.transpose(conf_data, (0, 2, 1))               # (B, C, P)

    # ---- generation-aware VMEM budgeting ------------------------------------
    lane, sub = 128, 8
    p_pad = -(-P // lane) * lane
    spad = lambda n: -(-n // sub) * sub
    conf_isz = jnp.dtype(conf_data.dtype).itemsize
    loc_isz = jnp.dtype(loc_data.dtype).itemsize
    input_bytes = (spad(C) * conf_isz + 2 * spad(4) * loc_isz
                   + 2 * spad(1) * 4) * p_pad
    # in-kernel live temporaries (f32 conf cast, exp, iota, where, lc arrays)
    temp_bytes = 4 * spad(C) * p_pad * 4 + 16 * spad(1) * p_pad * 4
    per_img = 2 * input_bytes + temp_bytes        # double-buffered inputs + temps

    try:
        vmem_cap = int(pltpu.get_tpu_info().vmem_capacity_bytes)
    except Exception:
        vmem_cap = 64 * 1024 * 1024               # conservative (v7x physical)
    budget = min(vmem_cap // 4, 14 * 1024 * 1024)

    # bb: divisor of B (no jnp.pad HBM rewrite), fits the budget, and keeps
    # nblk >= min(4, B) so the parallel batch grid feeds both v7x cores with
    # several pipelined steps each.
    bb = 1
    for cand in range(1, B + 1):
        if B % cand:
            continue
        if (B // cand) < min(4, B):
            break
        if cand * per_img <= budget:
            bb = cand
    nblk = B // bb

    est = bb * per_img
    vmem_limit = int(min(max(4 * est, 32 * 1024 * 1024),
                         vmem_cap - 4 * 1024 * 1024))
    vmem_limit = max(vmem_limit, 16 * 1024 * 1024)

    kernel = functools.partial(_multibox_loss_kernel,
                               negpos_ratio=int(negpos_ratio))

    out = pl.pallas_call(
        kernel,
        out_shape=jax.ShapeDtypeStruct((nblk, 1, 3), jnp.float32),
        grid_spec=pltpu.PrefetchScalarGridSpec(
            num_scalar_prefetch=0,
            grid=(nblk,),
            in_specs=[
                pl.BlockSpec((bb, 4, P), lambda g: (g, 0, 0)),   # loc preds
                pl.BlockSpec((bb, 4, P), lambda g: (g, 0, 0)),   # loc targets
                pl.BlockSpec((bb, C, P), lambda g: (g, 0, 0)),   # class conf
                pl.BlockSpec((bb, 1, P), lambda g: (g, 0, 0)),   # conf targets
                pl.BlockSpec((bb, 1, P), lambda g: (g, 0, 0)),   # positive mask
            ],
            out_specs=pl.BlockSpec((1, 1, 3), lambda g: (g, 0, 0)),
        ),
        compiler_params=pltpu.CompilerParams(
            dimension_semantics=("parallel",),
            vmem_limit_bytes=vmem_limit),
    )(loc_p_t, loc_t_t, conf_tr, conf_t_i, pos_f)

    # Final reduce + normalization by N = total positives (N==0 -> Inf, as in
    # the original torch module).
    n_tot = jnp.sum(out[:, 0, 2])
    return jnp.sum(out[:, 0, 0]) / n_tot, jnp.sum(out[:, 0, 1]) / n_tot


# ----------------------------------------------------------------------------
# Plain-JAX glue: prior/GT matching (refine_match) and box utilities
# ----------------------------------------------------------------------------
def point_form(priors):
    return jnp.concatenate([priors[:, :2] - priors[:, 2:] / 2.0,
                            priors[:, :2] + priors[:, 2:] / 2.0], axis=1)


def center_size(boxes):
    return jnp.concatenate([(boxes[:, :2] + boxes[:, 2:]) / 2.0,
                            boxes[:, 2:] - boxes[:, :2]], axis=1)


def jaccard(box_a, box_b):
    max_xy = jnp.minimum(box_a[:, None, 2:], box_b[None, :, 2:])
    min_xy = jnp.maximum(box_a[:, None, :2], box_b[None, :, :2])
    inter_wh = jnp.clip(max_xy - min_xy, 0.0, None)
    inter = inter_wh[..., 0] * inter_wh[..., 1]
    area_a = ((box_a[:, 2] - box_a[:, 0]) * (box_a[:, 3] - box_a[:, 1]))[:, None]
    area_b = ((box_b[:, 2] - box_b[:, 0]) * (box_b[:, 3] - box_b[:, 1]))[None, :]
    return inter / (area_a + area_b - inter)


def encode(matched, priors, variances):
    g_cxcy = (matched[:, :2] + matched[:, 2:]) / 2.0 - priors[:, :2]
    g_cxcy = g_cxcy / (variances[0] * priors[:, 2:])
    g_wh = (matched[:, 2:] - matched[:, :2]) / priors[:, 2:]
    g_wh = jnp.log(g_wh) / variances[1]
    return jnp.concatenate([g_cxcy, g_wh], axis=1)


def decode(loc, priors, variances):
    xy = priors[:, :2] + loc[:, :2] * variances[0] * priors[:, 2:]
    wh = priors[:, 2:] * jnp.exp(loc[:, 2:] * variances[1])
    mins = xy - wh / 2.0
    maxs = mins + wh
    return jnp.concatenate([mins, maxs], axis=1)


def refine_match(threshold, truths, priors, variances, labels, arm_loc=None):
    """Returns (loc_t (P,4), conf_t (P,)) for one image."""
    if arm_loc is None:
        ref_boxes = point_form(priors)              # point form of priors
        enc_priors = priors                         # center form
    else:
        ref_boxes = decode(arm_loc, priors, variances)
        enc_priors = center_size(ref_boxes)
    overlaps = jaccard(truths, ref_boxes)           # (T, P)
    best_prior_idx = jnp.argmax(overlaps, axis=1)   # (T,)
    best_truth_overlap = jnp.max(overlaps, axis=0)  # (P,)
    best_truth_idx = jnp.argmax(overlaps, axis=0)   # (P,)
    best_truth_overlap = best_truth_overlap.at[best_prior_idx].set(2.0)
    for j in range(truths.shape[0]):                # every GT keeps its best prior
        best_truth_idx = best_truth_idx.at[best_prior_idx[j]].set(j)
    matches = truths[best_truth_idx]
    conf = labels[best_truth_idx]
    conf = jnp.where(best_truth_overlap < threshold, 0, conf)
    loc = encode(matches, enc_priors, variances)
    return loc, conf


# ----------------------------------------------------------------------------
# Module wrapper mirroring RefineDetMultiBoxLoss.forward
# ----------------------------------------------------------------------------
class RefineDetMultiBoxLossPallas:
    def __init__(self, num_classes, overlap_thresh, neg_pos,
                 variance=(0.1, 0.2),  # cfg[img_size]['variance']
                 theta=0.01, is_ODM=False):
        self.num_classes = num_classes
        self.threshold = overlap_thresh
        self.negpos_ratio = neg_pos
        self.variance = variance
        self.theta = theta
        self.is_ODM = is_ODM

    def build_targets(self, predictions, targets):
        arm_loc, arm_conf, odm_loc, odm_conf, priors = predictions
        if self.is_ODM:
            loc_data, conf_data = odm_loc, odm_conf
        else:
            loc_data, conf_data = arm_loc, arm_conf
        num = loc_data.shape[0]
        priors = priors[:loc_data.shape[1], :]
        loc_t_list, conf_t_list = [], []
        for idx in range(num):
            truths = targets[idx][:, :-1]
            labels = targets[idx][:, -1]
            if not self.is_ODM:
                labels = (labels >= 0).astype(jnp.int32)   # binary objectness
            else:
                labels = labels.astype(jnp.int32)
            if self.is_ODM:
                loc, conf = refine_match(self.threshold, truths, priors,
                                         self.variance, labels, arm_loc[idx])
            else:
                loc, conf = refine_match(self.threshold, truths, priors,
                                         self.variance, labels, None)
            loc_t_list.append(loc)
            conf_t_list.append(conf)
        loc_t = jnp.stack(loc_t_list)
        conf_t = jnp.stack(conf_t_list)
        if self.is_ODM:
            arm_scores = jax.nn.softmax(arm_conf, axis=2)[:, :, 1]
            pos_mask = arm_scores > self.theta
        else:
            pos_mask = jnp.ones(conf_t.shape, dtype=bool)
        return loc_data, conf_data, loc_t, conf_t, pos_mask

    def __call__(self, predictions, targets):
        loc_data, conf_data, loc_t, conf_t, pos_mask = self.build_targets(
            predictions, targets)
        assert conf_data.shape[-1] == self.num_classes
        return multibox_loss_pallas(loc_data, conf_data, loc_t, conf_t,
                                    pos_mask, self.negpos_ratio)


# ----------------------------------------------------------------------------
# Pure-JAX reference of the loss math (mirrors the torch code path)
# ----------------------------------------------------------------------------
def reference_loss(loc_data, conf_data, loc_t, conf_t, pos_mask, negpos_ratio):
    num, P, C = conf_data.shape
    pos = jnp.logical_and(conf_t > 0, pos_mask)
    posf = pos.astype(jnp.float32)
    d = loc_data - loc_t
    ad = jnp.abs(d)
    sl1 = jnp.where(ad < 1.0, 0.5 * d * d, ad - 0.5)
    loss_l = jnp.sum(sl1 * posf[..., None])

    batch_conf = conf_data.reshape(-1, C)
    xmax = jnp.max(batch_conf)
    lse = jnp.log(jnp.sum(jnp.exp(batch_conf - xmax), axis=1)) + xmax
    gathered = jnp.take_along_axis(batch_conf, conf_t.reshape(-1, 1), axis=1)[:, 0]
    lc_all = (lse - gathered).reshape(num, P)
    lc_mask = jnp.where(pos, 0.0, lc_all)
    loss_idx = jnp.argsort(-lc_mask, axis=1)
    idx_rank = jnp.argsort(loss_idx, axis=1)
    num_pos = jnp.sum(pos.astype(jnp.int32), axis=1, keepdims=True)
    num_neg = jnp.minimum(negpos_ratio * num_pos, P - 1)
    neg = idx_rank < num_neg
    sel = jnp.logical_or(pos, neg)
    loss_c = jnp.sum(jnp.where(sel, lc_all, 0.0))
    N = jnp.sum(num_pos).astype(jnp.float32)
    return loss_l / N, loss_c / N


# ----------------------------------------------------------------------------
if __name__ == "__main__":
    B, P, T = 2, 128, 3          # batch, num_priors, num_objs per image
    C_ARM, C_ODM = 2, 4

    # deterministic priors: 8x8 grid, two scales  -> 128 priors (center form)
    fm = 8
    cs = (jnp.arange(fm, dtype=jnp.float32) + 0.5) / fm
    cxg, cyg = jnp.meshgrid(cs, cs, indexing="ij")
    centers = jnp.stack([cxg.ravel(), cyg.ravel()], axis=-1)          # (64,2)
    priors = jnp.concatenate(
        [jnp.concatenate([centers, jnp.full((64, 2), 0.20)], axis=-1),
         jnp.concatenate([centers, jnp.full((64, 2), 0.35)], axis=-1)], axis=0)

    key = jax.random.PRNGKey(0)
    k1, k2, k3, k4, k5, k6, k7 = jax.random.split(key, 7)
    mins = jax.random.uniform(k1, (B, T, 2), minval=0.05, maxval=0.55)
    whs = jax.random.uniform(k2, (B, T, 2), minval=0.15, maxval=0.40)
    boxes = jnp.concatenate([mins, mins + whs], axis=-1)              # point form
    labels = jax.random.randint(k3, (B, T), 1, C_ODM).astype(jnp.float32)
    targets = [jnp.concatenate([boxes[i], labels[i][:, None]], axis=-1)
               for i in range(B)]                                     # (T,5) each

    arm_loc = 0.1 * jax.random.normal(k4, (B, P, 4), dtype=jnp.float32)
    arm_conf = jax.random.normal(k5, (B, P, C_ARM), dtype=jnp.float32)
    odm_loc = 0.1 * jax.random.normal(k6, (B, P, 4), dtype=jnp.float32)
    odm_conf = jax.random.normal(k7, (B, P, C_ODM), dtype=jnp.float32)
    predictions = (arm_loc, arm_conf, odm_loc, odm_conf, priors)

    ok = True
    for is_odm, ncls in ((False, C_ARM), (True, C_ODM)):
        crit = RefineDetMultiBoxLossPallas(num_classes=ncls,
                                           overlap_thresh=0.5, neg_pos=3,
                                           is_ODM=is_odm)
        loss_l, loss_c = crit(predictions, targets)
        jax.block_until_ready((loss_l, loss_c))

        ld, cd, lt, ct, pm = crit.build_targets(predictions, targets)
        ref_l, ref_c = reference_loss(ld, cd, lt, ct, pm, 3)
        ok &= np.allclose(float(loss_l), float(ref_l), rtol=2e-3, atol=1e-3)
        ok &= np.allclose(float(loss_c), float(ref_c), rtol=2e-3, atol=1e-3)

    # TODO(synk): args.ischeck torch.save debug dumps from the original module
    # are intentionally omitted (no file I/O in this synthetic kernel).
    if ok:
        print("KERNEL_OK")
    else:
        print("MISMATCH")
</pallas_src>

<mosaic_0001>
module attributes {stable_mosaic.version = 11 : i64} {
  func.func @_multibox_loss_kernel(%arg0: i32, %arg1: memref<1x4x128xf32, #tpu.memory_space<vmem>>, %arg2: memref<1x4x128xf32, #tpu.memory_space<vmem>>, %arg3: memref<1x2x128xf32, #tpu.memory_space<vmem>>, %arg4: memref<1x1x128xi32, #tpu.memory_space<vmem>>, %arg5: memref<1x1x128xf32, #tpu.memory_space<vmem>>, %arg6: memref<1x1x3xf32, #tpu.memory_space<vmem>>) attributes {dimension_semantics = [#tpu.dimension_semantics<parallel>], iteration_bounds = array<i64: 2>, scalar_prefetch = 0 : i64, scratch_operands = 0 : i64, tpu.core_type = #tpu.core_type<tc>, window_params = [{transform_indices = @transform_0, window_bounds = array<i64: 1, 4, 128>}, {transform_indices = @transform_1, window_bounds = array<i64: 1, 4, 128>}, {transform_indices = @transform_2, window_bounds = array<i64: 1, 2, 128>}, {transform_indices = @transform_3, window_bounds = array<i64: 1, 1, 128>}, {transform_indices = @transform_4, window_bounds = array<i64: 1, 1, 128>}, {transform_indices = @transform_5, window_bounds = array<i64: 1, 1, 3>}]} {
    %c0 = arith.constant 0 : index
    %c0_0 = arith.constant 0 : index
    %c0_1 = arith.constant 0 : index
    %0 = vector.load %arg3[%c0, %c0_0, %c0_1] : memref<1x2x128xf32, #tpu.memory_space<vmem>>, vector<1x2x128xf32>
    %c0_2 = arith.constant 0 : index
    %c0_3 = arith.constant 0 : index
    %c0_4 = arith.constant 0 : index
    %1 = vector.load %arg4[%c0_2, %c0_3, %c0_4] : memref<1x1x128xi32, #tpu.memory_space<vmem>>, vector<1x1x128xi32>
    %c0_5 = arith.constant 0 : index
    %c0_6 = arith.constant 0 : index
    %c0_7 = arith.constant 0 : index
    %2 = vector.load %arg5[%c0_5, %c0_6, %c0_7] : memref<1x1x128xf32, #tpu.memory_space<vmem>>, vector<1x1x128xf32>
    %cst = arith.constant 5.000000e-01 : f32
    %3 = vector.broadcast %cst : f32 to vector<1x1x128xf32>
    %4 = arith.cmpf ogt, %2, %3 : vector<1x1x128xf32>
    %5 = arith.extui %4 : vector<1x1x128xi1> to vector<1x1x128xi32>
    %6 = arith.sitofp %5 : vector<1x1x128xi32> to vector<1x1x128xf32>
    %c0_8 = arith.constant 0 : index
    %c0_9 = arith.constant 0 : index
    %c0_10 = arith.constant 0 : index
    %7 = vector.load %arg1[%c0_8, %c0_9, %c0_10] : memref<1x4x128xf32, #tpu.memory_space<vmem>>, vector<1x4x128xf32>
    %c0_11 = arith.constant 0 : index
    %c0_12 = arith.constant 0 : index
    %c0_13 = arith.constant 0 : index
    %8 = vector.load %arg2[%c0_11, %c0_12, %c0_13] : memref<1x4x128xf32, #tpu.memory_space<vmem>>, vector<1x4x128xf32>
    %9 = arith.subf %7, %8 : vector<1x4x128xf32>
    %10 = math.absf %9 : vector<1x4x128xf32>
    %cst_14 = arith.constant 1.000000e+00 : f32
    %11 = vector.broadcast %cst_14 : f32 to vector<1x4x128xf32>
    %12 = arith.cmpf olt, %10, %11 : vector<1x4x128xf32>
    %cst_15 = arith.constant 5.000000e-01 : f32
    %13 = vector.broadcast %cst_15 : f32 to vector<1x4x128xf32>
    %14 = arith.mulf %13, %9 : vector<1x4x128xf32>
    %15 = arith.mulf %14, %9 : vector<1x4x128xf32>
    %cst_16 = arith.constant 5.000000e-01 : f32
    %16 = vector.broadcast %cst_16 : f32 to vector<1x4x128xf32>
    %17 = arith.subf %10, %16 : vector<1x4x128xf32>
    %18 = arith.select %12, %15, %17 : vector<1x4x128xi1>, vector<1x4x128xf32>
    %cst_17 = arith.constant dense<0.000000e+00> : vector<1x128xf32>
    %19 = vector.multi_reduction <add>, %18, %cst_17 [1] : vector<1x4x128xf32> to vector<1x128xf32>
    %20 = vector.shape_cast %19 : vector<1x128xf32> to vector<1x1x128xf32>
    %21 = arith.mulf %20, %6 : vector<1x1x128xf32>
    %cst_18 = arith.constant dense<0.000000e+00> : vector<1x1xf32>
    %22 = vector.multi_reduction <add>, %21, %cst_18 [2] : vector<1x1x128xf32> to vector<1x1xf32>
    %23 = vector.shape_cast %22 : vector<1x1xf32> to vector<1x1x1xf32>
    %cst_19 = arith.constant dense<0.000000e+00> : vector<1x1xf32>
    %24 = vector.multi_reduction <add>, %23, %cst_19 [0] : vector<1x1x1xf32> to vector<1x1xf32>
    %25 = vector.shape_cast %24 : vector<1x1xf32> to vector<1x1x1xf32>
    %cst_20 = arith.constant dense<0xFF800000> : vector<1x128xf32>
    %26 = vector.multi_reduction <maximumf>, %0, %cst_20 [1] : vector<1x2x128xf32> to vector<1x128xf32>
    %27 = vector.shape_cast %26 : vector<1x128xf32> to vector<1x1x128xf32>
    %28 = vector.broadcast %27 : vector<1x1x128xf32> to vector<1x2x128xf32>
    %29 = arith.subf %0, %28 : vector<1x2x128xf32>
    %30 = math.exp %29 : vector<1x2x128xf32>
    %cst_21 = arith.constant dense<0.000000e+00> : vector<1x128xf32>
    %31 = vector.multi_reduction <add>, %30, %cst_21 [1] : vector<1x2x128xf32> to vector<1x128xf32>
    %32 = vector.shape_cast %31 : vector<1x128xf32> to vector<1x1x128xf32>
    %33 = math.log %32 : vector<1x1x128xf32>
    %34 = arith.addf %33, %27 : vector<1x1x128xf32>
    %35 = tpu.iota {dimensions = array<i32: 1>} : vector<1x2x128xi32>
    %36 = vector.broadcast %1 : vector<1x1x128xi32> to vector<1x2x128xi32>
    %37 = arith.cmpi eq, %35, %36 : vector<1x2x128xi32>
    %cst_22 = arith.constant 0.000000e+00 : f32
    %38 = vector.broadcast %cst_22 : f32 to vector<1x2x128xf32>
    %39 = arith.select %37, %0, %38 : vector<1x2x128xi1>, vector<1x2x128xf32>
    %cst_23 = arith.constant dense<0.000000e+00> : vector<1x128xf32>
    %40 = vector.multi_reduction <add>, %39, %cst_23 [1] : vector<1x2x128xf32> to vector<1x128xf32>
    %41 = vector.shape_cast %40 : vector<1x128xf32> to vector<1x1x128xf32>
    %42 = arith.subf %34, %41 : vector<1x1x128xf32>
    %cst_24 = arith.constant 0.000000e+00 : f32
    %43 = vector.broadcast %cst_24 : f32 to vector<1x1x128xf32>
    %44 = arith.select %4, %43, %42 : vector<1x1x128xi1>, vector<1x1x128xf32>
    %cst_25 = arith.constant 0.000000e+00 : f32
    %45 = vector.broadcast %cst_25 : f32 to vector<1x1x128xf32>
    %46 = arith.maximumf %44, %45 : vector<1x1x128xf32>
    %cst_26 = arith.constant dense<0.000000e+00> : vector<1x1xf32>
    %47 = vector.multi_reduction <add>, %6, %cst_26 [2] : vector<1x1x128xf32> to vector<1x1xf32>
    %48 = vector.shape_cast %47 : vector<1x1xf32> to vector<1x1x1xf32>
    %49 = arith.fptosi %48 : vector<1x1x1xf32> to vector<1x1x1xi32>
    %c3_i32 = arith.constant 3 : i32
    %50 = vector.broadcast %c3_i32 : i32 to vector<1x1x1xi32>
    %51 = arith.muli %50, %49 : vector<1x1x1xi32>
    %c127_i32 = arith.constant 127 : i32
    %52 = vector.broadcast %c127_i32 : i32 to vector<1x1x1xi32>
    %53 = arith.minsi %51, %52 : vector<1x1x1xi32>
    %54 = tpu.bitcast %46 : vector<1x1x128xf32> -> vector<1x1x128xi32>
    %c0_i32 = arith.constant 0 : i32
    %55 = vector.broadcast %c0_i32 : i32 to vector<1x1x1xi32>
    %c536870912_i32 = arith.constant 536870912 : i32
    %56 = vector.broadcast %c536870912_i32 : i32 to vector<1x1x1xi32>
    %57 = arith.ori %55, %56 : vector<1x1x1xi32>
    %c1073741824_i32 = arith.constant 1073741824 : i32
    %58 = vector.broadcast %c1073741824_i32 : i32 to vector<1x1x1xi32>
    %59 = arith.ori %55, %58 : vector<1x1x1xi32>
    %c1610612736_i32 = arith.constant 1610612736 : i32
    %60 = vector.broadcast %c1610612736_i32 : i32 to vector<1x1x1xi32>
    %61 = arith.ori %55, %60 : vector<1x1x1xi32>
    %62 = vector.broadcast %57 : vector<1x1x1xi32> to vector<1x1x128xi32>
    %63 = arith.cmpi sge, %54, %62 : vector<1x1x128xi32>
    %64 = arith.extui %63 : vector<1x1x128xi1> to vector<1x1x128xi32>
    %cst_27 = arith.constant dense<0> : vector<1x1xi32>
    %65 = vector.multi_reduction <add>, %64, %cst_27 [2] : vector<1x1x128xi32> to vector<1x1xi32>
    %66 = vector.shape_cast %65 : vector<1x1xi32> to vector<1x1x1xi32>
    %67 = arith.cmpi sge, %66, %53 : vector<1x1x1xi32>
    %68 = vector.broadcast %59 : vector<1x1x1xi32> to vector<1x1x128xi32>
    %69 = arith.cmpi sge, %54, %68 : vector<1x1x128xi32>
    %70 = arith.extui %69 : vector<1x1x128xi1> to vector<1x1x128xi32>
    %cst_28 = arith.constant dense<0> : vector<1x1xi32>
    %71 = vector.multi_reduction <add>, %70, %cst_28 [2] : vector<1x1x128xi32> to vector<1x1xi32>
    %72 = vector.shape_cast %71 : vector<1x1xi32> to vector<1x1x1xi32>
    %73 = arith.cmpi sge, %72, %53 : vector<1x1x1xi32>
    %74 = vector.broadcast %61 : vector<1x1x1xi32> to vector<1x1x128xi32>
    %75 = arith.cmpi sge, %54, %74 : vector<1x1x128xi32>
    %76 = arith.extui %75 : vector<1x1x128xi1> to vector<1x1x128xi32>
    %cst_29 = arith.constant dense<0> : vector<1x1xi32>
    %77 = vector.multi_reduction <add>, %76, %cst_29 [2] : vector<1x1x128xi32> to vector<1x1xi32>
    %78 = vector.shape_cast %77 : vector<1x1xi32> to vector<1x1x1xi32>
    %79 = arith.cmpi sge, %78, %53 : vector<1x1x1xi32>
    %80 = arith.select %67, %57, %55 : vector<1x1x1xi1>, vector<1x1x1xi32>
    %81 = arith.select %73, %59, %80 : vector<1x1x1xi1>, vector<1x1x1xi32>
    %82 = arith.select %79, %61, %81 : vector<1x1x1xi1>, vector<1x1x1xi32>
    %c134217728_i32 = arith.constant 134217728 : i32
    %83 = vector.broadcast %c134217728_i32 : i32 to vector<1x1x1xi32>
    %84 = arith.ori %82, %83 : vector<1x1x1xi32>
    %c268435456_i32 = arith.constant 268435456 : i32
    %85 = vector.broadcast %c268435456_i32 : i32 to vector<1x1x1xi32>
    %86 = arith.ori %82, %85 : vector<1x1x1xi32>
    %c402653184_i32 = arith.constant 402653184 : i32
    %87 = vector.broadcast %c402653184_i32 : i32 to vector<1x1x1xi32>
    %88 = arith.ori %82, %87 : vector<1x1x1xi32>
    %89 = vector.broadcast %84 : vector<1x1x1xi32> to vector<1x1x128xi32>
    %90 = arith.cmpi sge, %54, %89 : vector<1x1x128xi32>
    %91 = arith.extui %90 : vector<1x1x128xi1> to vector<1x1x128xi32>
    %cst_30 = arith.constant dense<0> : vector<1x1xi32>
    %92 = vector.multi_reduction <add>, %91, %cst_30 [2] : vector<1x1x128xi32> to vector<1x1xi32>
    %93 = vector.shape_cast %92 : vector<1x1xi32> to vector<1x1x1xi32>
    %94 = arith.cmpi sge, %93, %53 : vector<1x1x1xi32>
    %95 = vector.broadcast %86 : vector<1x1x1xi32> to vector<1x1x128xi32>
    %96 = arith.cmpi sge, %54, %95 : vector<1x1x128xi32>
    %97 = arith.extui %96 : vector<1x1x128xi1> to vector<1x1x128xi32>
    %cst_31 = arith.constant dense<0> : vector<1x1xi32>
    %98 = vector.multi_reduction <add>, %97, %cst_31 [2] : vector<1x1x128xi32> to vector<1x1xi32>
    %99 = vector.shape_cast %98 : vector<1x1xi32> to vector<1x1x1xi32>
    %100 = arith.cmpi sge, %99, %53 : vector<1x1x1xi32>
    %101 = vector.broadcast %88 : vector<1x1x1xi32> to vector<1x1x128xi32>
    %102 = arith.cmpi sge, %54, %101 : vector<1x1x128xi32>
    %103 = arith.extui %102 : vector<1x1x128xi1> to vector<1x1x128xi32>
    %cst_32 = arith.constant dense<0> : vector<1x1xi32>
    %104 = vector.multi_reduction <add>, %103, %cst_32 [2] : vector<1x1x128xi32> to vector<1x1xi32>
    %105 = vector.shape_cast %104 : vector<1x1xi32> to vector<1x1x1xi32>
    %106 = arith.cmpi sge, %105, %53 : vector<1x1x1xi32>
    %107 = arith.select %94, %84, %82 : vector<1x1x1xi1>, vector<1x1x1xi32>
    %108 = arith.select %100, %86, %107 : vector<1x1x1xi1>, vector<1x1x1xi32>
    %109 = arith.select %106, %88, %108 : vector<1x1x1xi1>, vector<1x1x1xi32>
    %c33554432_i32 = arith.constant 33554432 : i32
    %110 = vector.broadcast %c33554432_i32 : i32 to vector<1x1x1xi32>
    %111 = arith.ori %109, %110 : vector<1x1x1xi32>
    %c67108864_i32 = arith.constant 67108864 : i32
    %112 = vector.broadcast %c67108864_i32 : i32 to vector<1x1x1xi32>
    %113 = arith.ori %109, %112 : vector<1x1x1xi32>
    %c100663296_i32 = arith.constant 100663296 : i32
    %114 = vector.broadcast %c100663296_i32 : i32 to vector<1x1x1xi32>
    %115 = arith.ori %109, %114 : vector<1x1x1xi32>
    %116 = vector.broadcast %111 : vector<1x1x1xi32> to vector<1x1x128xi32>
    %117 = arith.cmpi sge, %54, %116 : vector<1x1x128xi32>
    %118 = arith.extui %117 : vector<1x1x128xi1> to vector<1x1x128xi32>
    %cst_33 = arith.constant dense<0> : vector<1x1xi32>
    %119 = vector.multi_reduction <add>, %118, %cst_33 [2] : vector<1x1x128xi32> to vector<1x1xi32>
    %120 = vector.shape_cast %119 : vector<1x1xi32> to vector<1x1x1xi32>
    %121 = arith.cmpi sge, %120, %53 : vector<1x1x1xi32>
    %122 = vector.broadcast %113 : vector<1x1x1xi32> to vector<1x1x128xi32>
    %123 = arith.cmpi sge, %54, %122 : vector<1x1x128xi32>
    %124 = arith.extui %123 : vector<1x1x128xi1> to vector<1x1x128xi32>
    %cst_34 = arith.constant dense<0> : vector<1x1xi32>
    %125 = vector.multi_reduction <add>, %124, %cst_34 [2] : vector<1x1x128xi32> to vector<1x1xi32>
    %126 = vector.shape_cast %125 : vector<1x1xi32> to vector<1x1x1xi32>
    %127 = arith.cmpi sge, %126, %53 : vector<1x1x1xi32>
    %128 = vector.broadcast %115 : vector<1x1x1xi32> to vector<1x1x128xi32>
    %129 = arith.cmpi sge, %54, %128 : vector<1x1x128xi32>
    %130 = arith.extui %129 : vector<1x1x128xi1> to vector<1x1x128xi32>
    %cst_35 = arith.constant dense<0> : vector<1x1xi32>
    %131 = vector.multi_reduction <add>, %130, %cst_35 [2] : vector<1x1x128xi32> to vector<1x1xi32>
    %132 = vector.shape_cast %131 : vector<1x1xi32> to vector<1x1x1xi32>
    %133 = arith.cmpi sge, %132, %53 : vector<1x1x1xi32>
    %134 = arith.select %121, %111, %109 : vector<1x1x1xi1>, vector<1x1x1xi32>
    %135 = arith.select %127, %113, %134 : vector<1x1x1xi1>, vector<1x1x1xi32>
    %136 = arith.select %133, %115, %135 : vector<1x1x1xi1>, vector<1x1x1xi32>
    %c8388608_i32 = arith.constant 8388608 : i32
    %137 = vector.broadcast %c8388608_i32 : i32 to vector<1x1x1xi32>
    %138 = arith.ori %136, %137 : vector<1x1x1xi32>
    %c16777216_i32 = arith.constant 16777216 : i32
    %139 = vector.broadcast %c16777216_i32 : i32 to vector<1x1x1xi32>
    %140 = arith.ori %136, %139 : vector<1x1x1xi32>
    %c25165824_i32 = arith.constant 25165824 : i32
    %141 = vector.broadcast %c25165824_i32 : i32 to vector<1x1x1xi32>
    %142 = arith.ori %136, %141 : vector<1x1x1xi32>
    %143 = vector.broadcast %138 : vector<1x1x1xi32> to vector<1x1x128xi32>
    %144 = arith.cmpi sge, %54, %143 : vector<1x1x128xi32>
    %145 = arith.extui %144 : vector<1x1x128xi1> to vector<1x1x128xi32>
    %cst_36 = arith.constant dense<0> : vector<1x1xi32>
    %146 = vector.multi_reduction <add>, %145, %cst_36 [2] : vector<1x1x128xi32> to vector<1x1xi32>
    %147 = vector.shape_cast %146 : vector<1x1xi32> to vector<1x1x1xi32>
    %148 = arith.cmpi sge, %147, %53 : vector<1x1x1xi32>
    %149 = vector.broadcast %140 : vector<1x1x1xi32> to vector<1x1x128xi32>
    %150 = arith.cmpi sge, %54, %149 : vector<1x1x128xi32>
    %151 = arith.extui %150 : vector<1x1x128xi1> to vector<1x1x128xi32>
    %cst_37 = arith.constant dense<0> : vector<1x1xi32>
    %152 = vector.multi_reduction <add>, %151, %cst_37 [2] : vector<1x1x128xi32> to vector<1x1xi32>
    %153 = vector.shape_cast %152 : vector<1x1xi32> to vector<1x1x1xi32>
    %154 = arith.cmpi sge, %153, %53 : vector<1x1x1xi32>
    %155 = vector.broadcast %142 : vector<1x1x1xi32> to vector<1x1x128xi32>
    %156 = arith.cmpi sge, %54, %155 : vector<1x1x128xi32>
    %157 = arith.extui %156 : vector<1x1x128xi1> to vector<1x1x128xi32>
    %cst_38 = arith.constant dense<0> : vector<1x1xi32>
    %158 = vector.multi_reduction <add>, %157, %cst_38 [2] : vector<1x1x128xi32> to vector<1x1xi32>
    %159 = vector.shape_cast %158 : vector<1x1xi32> to vector<1x1x1xi32>
    %160 = arith.cmpi sge, %159, %53 : vector<1x1x1xi32>
    %161 = arith.select %148, %138, %136 : vector<1x1x1xi1>, vector<1x1x1xi32>
    %162 = arith.select %154, %140, %161 : vector<1x1x1xi1>, vector<1x1x1xi32>
    %163 = arith.select %160, %142, %162 : vector<1x1x1xi1>, vector<1x1x1xi32>
    %c2097152_i32 = arith.constant 2097152 : i32
    %164 = vector.broadcast %c2097152_i32 : i32 to vector<1x1x1xi32>
    %165 = arith.ori %163, %164 : vector<1x1x1xi32>
    %c4194304_i32 = arith.constant 4194304 : i32
    %166 = vector.broadcast %c4194304_i32 : i32 to vector<1x1x1xi32>
    %167 = arith.ori %163, %166 : vector<1x1x1xi32>
    %c6291456_i32 = arith.constant 6291456 : i32
    %168 = vector.broadcast %c6291456_i32 : i32 to vector<1x1x1xi32>
    %169 = arith.ori %163, %168 : vector<1x1x1xi32>
    %170 = vector.broadcast %165 : vector<1x1x1xi32> to vector<1x1x128xi32>
    %171 = arith.cmpi sge, %54, %170 : vector<1x1x128xi32>
    %172 = arith.extui %171 : vector<1x1x128xi1> to vector<1x1x128xi32>
    %cst_39 = arith.constant dense<0> : vector<1x1xi32>
    %173 = vector.multi_reduction <add>, %172, %cst_39 [2] : vector<1x1x128xi32> to vector<1x1xi32>
    %174 = vector.shape_cast %173 : vector<1x1xi32> to vector<1x1x1xi32>
    %175 = arith.cmpi sge, %174, %53 : vector<1x1x1xi32>
    %176 = vector.broadcast %167 : vector<1x1x1xi32> to vector<1x1x128xi32>
    %177 = arith.cmpi sge, %54, %176 : vector<1x1x128xi32>
    %178 = arith.extui %177 : vector<1x1x128xi1> to vector<1x1x128xi32>
    %cst_40 = arith.constant dense<0> : vector<1x1xi32>
    %179 = vector.multi_reduction <add>, %178, %cst_40 [2] : vector<1x1x128xi32> to vector<1x1xi32>
    %180 = vector.shape_cast %179 : vector<1x1xi32> to vector<1x1x1xi32>
    %181 = arith.cmpi sge, %180, %53 : vector<1x1x1xi32>
    %182 = vector.broadcast %169 : vector<1x1x1xi32> to vector<1x1x128xi32>
    %183 = arith.cmpi sge, %54, %182 : vector<1x1x128xi32>
    %184 = arith.extui %183 : vector<1x1x128xi1> to vector<1x1x128xi32>
    %cst_41 = arith.constant dense<0> : vector<1x1xi32>
    %185 = vector.multi_reduction <add>, %184, %cst_41 [2] : vector<1x1x128xi32> to vector<1x1xi32>
    %186 = vector.shape_cast %185 : vector<1x1xi32> to vector<1x1x1xi32>
    %187 = arith.cmpi sge, %186, %53 : vector<1x1x1xi32>
    %188 = arith.select %175, %165, %163 : vector<1x1x1xi1>, vector<1x1x1xi32>
    %189 = arith.select %181, %167, %188 : vector<1x1x1xi1>, vector<1x1x1xi32>
    %190 = arith.select %187, %169, %189 : vector<1x1x1xi1>, vector<1x1x1xi32>
    %c524288_i32 = arith.constant 524288 : i32
    %191 = vector.broadcast %c524288_i32 : i32 to vector<1x1x1xi32>
    %192 = arith.ori %190, %191 : vector<1x1x1xi32>
    %c1048576_i32 = arith.constant 1048576 : i32
    %193 = vector.broadcast %c1048576_i32 : i32 to vector<1x1x1xi32>
    %194 = arith.ori %190, %193 : vector<1x1x1xi32>
    %c1572864_i32 = arith.constant 1572864 : i32
    %195 = vector.broadcast %c1572864_i32 : i32 to vector<1x1x1xi32>
    %196 = arith.ori %190, %195 : vector<1x1x1xi32>
    %197 = vector.broadcast %192 : vector<1x1x1xi32> to vector<1x1x128xi32>
    %198 = arith.cmpi sge, %54, %197 : vector<1x1x128xi32>
    %199 = arith.extui %198 : vector<1x1x128xi1> to vector<1x1x128xi32>
    %cst_42 = arith.constant dense<0> : vector<1x1xi32>
    %200 = vector.multi_reduction <add>, %199, %cst_42 [2] : vector<1x1x128xi32> to vector<1x1xi32>
    %201 = vector.shape_cast %200 : vector<1x1xi32> to vector<1x1x1xi32>
    %202 = arith.cmpi sge, %201, %53 : vector<1x1x1xi32>
    %203 = vector.broadcast %194 : vector<1x1x1xi32> to vector<1x1x128xi32>
    %204 = arith.cmpi sge, %54, %203 : vector<1x1x128xi32>
    %205 = arith.extui %204 : vector<1x1x128xi1> to vector<1x1x128xi32>
    %cst_43 = arith.constant dense<0> : vector<1x1xi32>
    %206 = vector.multi_reduction <add>, %205, %cst_43 [2] : vector<1x1x128xi32> to vector<1x1xi32>
    %207 = vector.shape_cast %206 : vector<1x1xi32> to vector<1x1x1xi32>
    %208 = arith.cmpi sge, %207, %53 : vector<1x1x1xi32>
    %209 = vector.broadcast %196 : vector<1x1x1xi32> to vector<1x1x128xi32>
    %210 = arith.cmpi sge, %54, %209 : vector<1x1x128xi32>
    %211 = arith.extui %210 : vector<1x1x128xi1> to vector<1x1x128xi32>
    %cst_44 = arith.constant dense<0> : vector<1x1xi32>
    %212 = vector.multi_reduction <add>, %211, %cst_44 [2] : vector<1x1x128xi32> to vector<1x1xi32>
    %213 = vector.shape_cast %212 : vector<1x1xi32> to vector<1x1x1xi32>
    %214 = arith.cmpi sge, %213, %53 : vector<1x1x1xi32>
    %215 = arith.select %202, %192, %190 : vector<1x1x1xi1>, vector<1x1x1xi32>
    %216 = arith.select %208, %194, %215 : vector<1x1x1xi1>, vector<1x1x1xi32>
    %217 = arith.select %214, %196, %216 : vector<1x1x1xi1>, vector<1x1x1xi32>
    %c131072_i32 = arith.constant 131072 : i32
    %218 = vector.broadcast %c131072_i32 : i32 to vector<1x1x1xi32>
    %219 = arith.ori %217, %218 : vector<1x1x1xi32>
    %c262144_i32 = arith.constant 262144 : i32
    %220 = vector.broadcast %c262144_i32 : i32 to vector<1x1x1xi32>
    %221 = arith.ori %217, %220 : vector<1x1x1xi32>
    %c393216_i32 = arith.constant 393216 : i32
    %222 = vector.broadcast %c393216_i32 : i32 to vector<1x1x1xi32>
    %223 = arith.ori %217, %222 : vector<1x1x1xi32>
    %224 = vector.broadcast %219 : vector<1x1x1xi32> to vector<1x1x128xi32>
    %225 = arith.cmpi sge, %54, %224 : vector<1x1x128xi32>
    %226 = arith.extui %225 : vector<1x1x128xi1> to vector<1x1x128xi32>
    %cst_45 = arith.constant dense<0> : vector<1x1xi32>
    %227 = vector.multi_reduction <add>, %226, %cst_45 [2] : vector<1x1x128xi32> to vector<1x1xi32>
    %228 = vector.shape_cast %227 : vector<1x1xi32> to vector<1x1x1xi32>
    %229 = arith.cmpi sge, %228, %53 : vector<1x1x1xi32>
    %230 = vector.broadcast %221 : vector<1x1x1xi32> to vector<1x1x128xi32>
    %231 = arith.cmpi sge, %54, %230 : vector<1x1x128xi32>
    %232 = arith.extui %231 : vector<1x1x128xi1> to vector<1x1x128xi32>
    %cst_46 = arith.constant dense<0> : vector<1x1xi32>
    %233 = vector.multi_reduction <add>, %232, %cst_46 [2] : vector<1x1x128xi32> to vector<1x1xi32>
    %234 = vector.shape_cast %233 : vector<1x1xi32> to vector<1x1x1xi32>
    %235 = arith.cmpi sge, %234, %53 : vector<1x1x1xi32>
    %236 = vector.broadcast %223 : vector<1x1x1xi32> to vector<1x1x128xi32>
    %237 = arith.cmpi sge, %54, %236 : vector<1x1x128xi32>
    %238 = arith.extui %237 : vector<1x1x128xi1> to vector<1x1x128xi32>
    %cst_47 = arith.constant dense<0> : vector<1x1xi32>
    %239 = vector.multi_reduction <add>, %238, %cst_47 [2] : vector<1x1x128xi32> to vector<1x1xi32>
    %240 = vector.shape_cast %239 : vector<1x1xi32> to vector<1x1x1xi32>
    %241 = arith.cmpi sge, %240, %53 : vector<1x1x1xi32>
    %242 = arith.select %229, %219, %217 : vector<1x1x1xi1>, vector<1x1x1xi32>
    %243 = arith.select %235, %221, %242 : vector<1x1x1xi1>, vector<1x1x1xi32>
    %244 = arith.select %241, %223, %243 : vector<1x1x1xi1>, vector<1x1x1xi32>
    %c32768_i32 = arith.constant 32768 : i32
    %245 = vector.broadcast %c32768_i32 : i32 to vector<1x1x1xi32>
    %246 = arith.ori %244, %245 : vector<1x1x1xi32>
    %c65536_i32 = arith.constant 65536 : i32
    %247 = vector.broadcast %c65536_i32 : i32 to vector<1x1x1xi32>
    %248 = arith.ori %244, %247 : vector<1x1x1xi32>
    %c98304_i32 = arith.constant 98304 : i32
    %249 = vector.broadcast %c98304_i32 : i32 to vector<1x1x1xi32>
    %250 = arith.ori %244, %249 : vector<1x1x1xi32>
    %251 = vector.broadcast %246 : vector<1x1x1xi32> to vector<1x1x128xi32>
    %252 = arith.cmpi sge, %54, %251 : vector<1x1x128xi32>
    %253 = arith.extui %252 : vector<1x1x128xi1> to vector<1x1x128xi32>
    %cst_48 = arith.constant dense<0> : vector<1x1xi32>
    %254 = vector.multi_reduction <add>, %253, %cst_48 [2] : vector<1x1x128xi32> to vector<1x1xi32>
    %255 = vector.shape_cast %254 : vector<1x1xi32> to vector<1x1x1xi32>
    %256 = arith.cmpi sge, %255, %53 : vector<1x1x1xi32>
    %257 = vector.broadcast %248 : vector<1x1x1xi32> to vector<1x1x128xi32>
    %258 = arith.cmpi sge, %54, %257 : vector<1x1x128xi32>
    %259 = arith.extui %258 : vector<1x1x128xi1> to vector<1x1x128xi32>
    %cst_49 = arith.constant dense<0> : vector<1x1xi32>
    %260 = vector.multi_reduction <add>, %259, %cst_49 [2] : vector<1x1x128xi32> to vector<1x1xi32>
    %261 = vector.shape_cast %260 : vector<1x1xi32> to vector<1x1x1xi32>
    %262 = arith.cmpi sge, %261, %53 : vector<1x1x1xi32>
    %263 = vector.broadcast %250 : vector<1x1x1xi32> to vector<1x1x128xi32>
    %264 = arith.cmpi sge, %54, %263 : vector<1x1x128xi32>
    %265 = arith.extui %264 : vector<1x1x128xi1> to vector<1x1x128xi32>
    %cst_50 = arith.constant dense<0> : vector<1x1xi32>
    %266 = vector.multi_reduction <add>, %265, %cst_50 [2] : vector<1x1x128xi32> to vector<1x1xi32>
    %267 = vector.shape_cast %266 : vector<1x1xi32> to vector<1x1x1xi32>
    %268 = arith.cmpi sge, %267, %53 : vector<1x1x1xi32>
    %269 = arith.select %256, %246, %244 : vector<1x1x1xi1>, vector<1x1x1xi32>
    %270 = arith.select %262, %248, %269 : vector<1x1x1xi1>, vector<1x1x1xi32>
    %271 = arith.select %268, %250, %270 : vector<1x1x1xi1>, vector<1x1x1xi32>
    %c8192_i32 = arith.constant 8192 : i32
    %272 = vector.broadcast %c8192_i32 : i32 to vector<1x1x1xi32>
    %273 = arith.ori %271, %272 : vector<1x1x1xi32>
    %c16384_i32 = arith.constant 16384 : i32
    %274 = vector.broadcast %c16384_i32 : i32 to vector<1x1x1xi32>
    %275 = arith.ori %271, %274 : vector<1x1x1xi32>
    %c24576_i32 = arith.constant 24576 : i32
    %276 = vector.broadcast %c24576_i32 : i32 to vector<1x1x1xi32>
    %277 = arith.ori %271, %276 : vector<1x1x1xi32>
    %278 = vector.broadcast %273 : vector<1x1x1xi32> to vector<1x1x128xi32>
    %279 = arith.cmpi sge, %54, %278 : vector<1x1x128xi32>
    %280 = arith.extui %279 : vector<1x1x128xi1> to vector<1x1x128xi32>
    %cst_51 = arith.constant dense<0> : vector<1x1xi32>
    %281 = vector.multi_reduction <add>, %280, %cst_51 [2] : vector<1x1x128xi32> to vector<1x1xi32>
    %282 = vector.shape_cast %281 : vector<1x1xi32> to vector<1x1x1xi32>
    %283 = arith.cmpi sge, %282, %53 : vector<1x1x1xi32>
    %284 = vector.broadcast %275 : vector<1x1x1xi32> to vector<1x1x128xi32>
    %285 = arith.cmpi sge, %54, %284 : vector<1x1x128xi32>
    %286 = arith.extui %285 : vector<1x1x128xi1> to vector<1x1x128xi32>
    %cst_52 = arith.constant dense<0> : vector<1x1xi32>
    %287 = vector.multi_reduction <add>, %286, %cst_52 [2] : vector<1x1x128xi32> to vector<1x1xi32>
    %288 = vector.shape_cast %287 : vector<1x1xi32> to vector<1x1x1xi32>
    %289 = arith.cmpi sge, %288, %53 : vector<1x1x1xi32>
    %290 = vector.broadcast %277 : vector<1x1x1xi32> to vector<1x1x128xi32>
    %291 = arith.cmpi sge, %54, %290 : vector<1x1x128xi32>
    %292 = arith.extui %291 : vector<1x1x128xi1> to vector<1x1x128xi32>
    %cst_53 = arith.constant dense<0> : vector<1x1xi32>
    %293 = vector.multi_reduction <add>, %292, %cst_53 [2] : vector<1x1x128xi32> to vector<1x1xi32>
    %294 = vector.shape_cast %293 : vector<1x1xi32> to vector<1x1x1xi32>
    %295 = arith.cmpi sge, %294, %53 : vector<1x1x1xi32>
    %296 = arith.select %283, %273, %271 : vector<1x1x1xi1>, vector<1x1x1xi32>
    %297 = arith.select %289, %275, %296 : vector<1x1x1xi1>, vector<1x1x1xi32>
    %298 = arith.select %295, %277, %297 : vector<1x1x1xi1>, vector<1x1x1xi32>
    %c2048_i32 = arith.constant 2048 : i32
    %299 = vector.broadcast %c2048_i32 : i32 to vector<1x1x1xi32>
    %300 = arith.ori %298, %299 : vector<1x1x1xi32>
    %c4096_i32 = arith.constant 4096 : i32
    %301 = vector.broadcast %c4096_i32 : i32 to vector<1x1x1xi32>
    %302 = arith.ori %298, %301 : vector<1x1x1xi32>
    %c6144_i32 = arith.constant 6144 : i32
    %303 = vector.broadcast %c6144_i32 : i32 to vector<1x1x1xi32>
    %304 = arith.ori %298, %303 : vector<1x1x1xi32>
    %305 = vector.broadcast %300 : vector<1x1x1xi32> to vector<1x1x128xi32>
    %306 = arith.cmpi sge, %54, %305 : vector<1x1x128xi32>
    %307 = arith.extui %306 : vector<1x1x128xi1> to vector<1x1x128xi32>
    %cst_54 = arith.constant dense<0> : vector<1x1xi32>
    %308 = vector.multi_reduction <add>, %307, %cst_54 [2] : vector<1x1x128xi32> to vector<1x1xi32>
    %309 = vector.shape_cast %308 : vector<1x1xi32> to vector<1x1x1xi32>
    %310 = arith.cmpi sge, %309, %53 : vector<1x1x1xi32>
    %311 = vector.broadcast %302 : vector<1x1x1xi32> to vector<1x1x128xi32>
    %312 = arith.cmpi sge, %54, %311 : vector<1x1x128xi32>
    %313 = arith.extui %312 : vector<1x1x128xi1> to vector<1x1x128xi32>
    %cst_55 = arith.constant dense<0> : vector<1x1xi32>
    %314 = vector.multi_reduction <add>, %313, %cst_55 [2] : vector<1x1x128xi32> to vector<1x1xi32>
    %315 = vector.shape_cast %314 : vector<1x1xi32> to vector<1x1x1xi32>
    %316 = arith.cmpi sge, %315, %53 : vector<1x1x1xi32>
    %317 = vector.broadcast %304 : vector<1x1x1xi32> to vector<1x1x128xi32>
    %318 = arith.cmpi sge, %54, %317 : vector<1x1x128xi32>
    %319 = arith.extui %318 : vector<1x1x128xi1> to vector<1x1x128xi32>
    %cst_56 = arith.constant dense<0> : vector<1x1xi32>
    %320 = vector.multi_reduction <add>, %319, %cst_56 [2] : vector<1x1x128xi32> to vector<1x1xi32>
    %321 = vector.shape_cast %320 : vector<1x1xi32> to vector<1x1x1xi32>
    %322 = arith.cmpi sge, %321, %53 : vector<1x1x1xi32>
    %323 = arith.select %310, %300, %298 : vector<1x1x1xi1>, vector<1x1x1xi32>
    %324 = arith.select %316, %302, %323 : vector<1x1x1xi1>, vector<1x1x1xi32>
    %325 = arith.select %322, %304, %324 : vector<1x1x1xi1>, vector<1x1x1xi32>
    %c512_i32 = arith.constant 512 : i32
    %326 = vector.broadcast %c512_i32 : i32 to vector<1x1x1xi32>
    %327 = arith.ori %325, %326 : vector<1x1x1xi32>
    %c1024_i32 = arith.constant 1024 : i32
    %328 = vector.broadcast %c1024_i32 : i32 to vector<1x1x1xi32>
    %329 = arith.ori %325, %328 : vector<1x1x1xi32>
    %c1536_i32 = arith.constant 1536 : i32
    %330 = vector.broadcast %c1536_i32 : i32 to vector<1x1x1xi32>
    %331 = arith.ori %325, %330 : vector<1x1x1xi32>
    %332 = vector.broadcast %327 : vector<1x1x1xi32> to vector<1x1x128xi32>
    %333 = arith.cmpi sge, %54, %332 : vector<1x1x128xi32>
    %334 = arith.extui %333 : vector<1x1x128xi1> to vector<1x1x128xi32>
    %cst_57 = arith.constant dense<0> : vector<1x1xi32>
    %335 = vector.multi_reduction <add>, %334, %cst_57 [2] : vector<1x1x128xi32> to vector<1x1xi32>
    %336 = vector.shape_cast %335 : vector<1x1xi32> to vector<1x1x1xi32>
    %337 = arith.cmpi sge, %336, %53 : vector<1x1x1xi32>
    %338 = vector.broadcast %329 : vector<1x1x1xi32> to vector<1x1x128xi32>
    %339 = arith.cmpi sge, %54, %338 : vector<1x1x128xi32>
    %340 = arith.extui %339 : vector<1x1x128xi1> to vector<1x1x128xi32>
    %cst_58 = arith.constant dense<0> : vector<1x1xi32>
    %341 = vector.multi_reduction <add>, %340, %cst_58 [2] : vector<1x1x128xi32> to vector<1x1xi32>
    %342 = vector.shape_cast %341 : vector<1x1xi32> to vector<1x1x1xi32>
    %343 = arith.cmpi sge, %342, %53 : vector<1x1x1xi32>
    %344 = vector.broadcast %331 : vector<1x1x1xi32> to vector<1x1x128xi32>
    %345 = arith.cmpi sge, %54, %344 : vector<1x1x128xi32>
    %346 = arith.extui %345 : vector<1x1x128xi1> to vector<1x1x128xi32>
    %cst_59 = arith.constant dense<0> : vector<1x1xi32>
    %347 = vector.multi_reduction <add>, %346, %cst_59 [2] : vector<1x1x128xi32> to vector<1x1xi32>
    %348 = vector.shape_cast %347 : vector<1x1xi32> to vector<1x1x1xi32>
    %349 = arith.cmpi sge, %348, %53 : vector<1x1x1xi32>
    %350 = arith.select %337, %327, %325 : vector<1x1x1xi1>, vector<1x1x1xi32>
    %351 = arith.select %343, %329, %350 : vector<1x1x1xi1>, vector<1x1x1xi32>
    %352 = arith.select %349, %331, %351 : vector<1x1x1xi1>, vector<1x1x1xi32>
    %c128_i32 = arith.constant 128 : i32
    %353 = vector.broadcast %c128_i32 : i32 to vector<1x1x1xi32>
    %354 = arith.ori %352, %353 : vector<1x1x1xi32>
    %c256_i32 = arith.constant 256 : i32
    %355 = vector.broadcast %c256_i32 : i32 to vector<1x1x1xi32>
    %356 = arith.ori %352, %355 : vector<1x1x1xi32>
    %c384_i32 = arith.constant 384 : i32
    %357 = vector.broadcast %c384_i32 : i32 to vector<1x1x1xi32>
    %358 = arith.ori %352, %357 : vector<1x1x1xi32>
    %359 = vector.broadcast %354 : vector<1x1x1xi32> to vector<1x1x128xi32>
    %360 = arith.cmpi sge, %54, %359 : vector<1x1x128xi32>
    %361 = arith.extui %360 : vector<1x1x128xi1> to vector<1x1x128xi32>
    %cst_60 = arith.constant dense<0> : vector<1x1xi32>
    %362 = vector.multi_reduction <add>, %361, %cst_60 [2] : vector<1x1x128xi32> to vector<1x1xi32>
    %363 = vector.shape_cast %362 : vector<1x1xi32> to vector<1x1x1xi32>
    %364 = arith.cmpi sge, %363, %53 : vector<1x1x1xi32>
    %365 = vector.broadcast %356 : vector<1x1x1xi32> to vector<1x1x128xi32>
    %366 = arith.cmpi sge, %54, %365 : vector<1x1x128xi32>
    %367 = arith.extui %366 : vector<1x1x128xi1> to vector<1x1x128xi32>
    %cst_61 = arith.constant dense<0> : vector<1x1xi32>
    %368 = vector.multi_reduction <add>, %367, %cst_61 [2] : vector<1x1x128xi32> to vector<1x1xi32>
    %369 = vector.shape_cast %368 : vector<1x1xi32> to vector<1x1x1xi32>
    %370 = arith.cmpi sge, %369, %53 : vector<1x1x1xi32>
    %371 = vector.broadcast %358 : vector<1x1x1xi32> to vector<1x1x128xi32>
    %372 = arith.cmpi sge, %54, %371 : vector<1x1x128xi32>
    %373 = arith.extui %372 : vector<1x1x128xi1> to vector<1x1x128xi32>
    %cst_62 = arith.constant dense<0> : vector<1x1xi32>
    %374 = vector.multi_reduction <add>, %373, %cst_62 [2] : vector<1x1x128xi32> to vector<1x1xi32>
    %375 = vector.shape_cast %374 : vector<1x1xi32> to vector<1x1x1xi32>
    %376 = arith.cmpi sge, %375, %53 : vector<1x1x1xi32>
    %377 = arith.select %364, %354, %352 : vector<1x1x1xi1>, vector<1x1x1xi32>
    %378 = arith.select %370, %356, %377 : vector<1x1x1xi1>, vector<1x1x1xi32>
    %379 = arith.select %376, %358, %378 : vector<1x1x1xi1>, vector<1x1x1xi32>
    %c32_i32 = arith.constant 32 : i32
    %380 = vector.broadcast %c32_i32 : i32 to vector<1x1x1xi32>
    %381 = arith.ori %379, %380 : vector<1x1x1xi32>
    %c64_i32 = arith.constant 64 : i32
    %382 = vector.broadcast %c64_i32 : i32 to vector<1x1x1xi32>
    %383 = arith.ori %379, %382 : vector<1x1x1xi32>
    %c96_i32 = arith.constant 96 : i32
    %384 = vector.broadcast %c96_i32 : i32 to vector<1x1x1xi32>
    %385 = arith.ori %379, %384 : vector<1x1x1xi32>
    %386 = vector.broadcast %381 : vector<1x1x1xi32> to vector<1x1x128xi32>
    %387 = arith.cmpi sge, %54, %386 : vector<1x1x128xi32>
    %388 = arith.extui %387 : vector<1x1x128xi1> to vector<1x1x128xi32>
    %cst_63 = arith.constant dense<0> : vector<1x1xi32>
    %389 = vector.multi_reduction <add>, %388, %cst_63 [2] : vector<1x1x128xi32> to vector<1x1xi32>
    %390 = vector.shape_cast %389 : vector<1x1xi32> to vector<1x1x1xi32>
    %391 = arith.cmpi sge, %390, %53 : vector<1x1x1xi32>
    %392 = vector.broadcast %383 : vector<1x1x1xi32> to vector<1x1x128xi32>
    %393 = arith.cmpi sge, %54, %392 : vector<1x1x128xi32>
    %394 = arith.extui %393 : vector<1x1x128xi1> to vector<1x1x128xi32>
    %cst_64 = arith.constant dense<0> : vector<1x1xi32>
    %395 = vector.multi_reduction <add>, %394, %cst_64 [2] : vector<1x1x128xi32> to vector<1x1xi32>
    %396 = vector.shape_cast %395 : vector<1x1xi32> to vector<1x1x1xi32>
    %397 = arith.cmpi sge, %396, %53 : vector<1x1x1xi32>
    %398 = vector.broadcast %385 : vector<1x1x1xi32> to vector<1x1x128xi32>
    %399 = arith.cmpi sge, %54, %398 : vector<1x1x128xi32>
    %400 = arith.extui %399 : vector<1x1x128xi1> to vector<1x1x128xi32>
    %cst_65 = arith.constant dense<0> : vector<1x1xi32>
    %401 = vector.multi_reduction <add>, %400, %cst_65 [2] : vector<1x1x128xi32> to vector<1x1xi32>
    %402 = vector.shape_cast %401 : vector<1x1xi32> to vector<1x1x1xi32>
    %403 = arith.cmpi sge, %402, %53 : vector<1x1x1xi32>
    %404 = arith.select %391, %381, %379 : vector<1x1x1xi1>, vector<1x1x1xi32>
    %405 = arith.select %397, %383, %404 : vector<1x1x1xi1>, vector<1x1x1xi32>
    %406 = arith.select %403, %385, %405 : vector<1x1x1xi1>, vector<1x1x1xi32>
    %c8_i32 = arith.constant 8 : i32
    %407 = vector.broadcast %c8_i32 : i32 to vector<1x1x1xi32>
    %408 = arith.ori %406, %407 : vector<1x1x1xi32>
    %c16_i32 = arith.constant 16 : i32
    %409 = vector.broadcast %c16_i32 : i32 to vector<1x1x1xi32>
    %410 = arith.ori %406, %409 : vector<1x1x1xi32>
    %c24_i32 = arith.constant 24 : i32
    %411 = vector.broadcast %c24_i32 : i32 to vector<1x1x1xi32>
    %412 = arith.ori %406, %411 : vector<1x1x1xi32>
    %413 = vector.broadcast %408 : vector<1x1x1xi32> to vector<1x1x128xi32>
    %414 = arith.cmpi sge, %54, %413 : vector<1x1x128xi32>
    %415 = arith.extui %414 : vector<1x1x128xi1> to vector<1x1x128xi32>
    %cst_66 = arith.constant dense<0> : vector<1x1xi32>
    %416 = vector.multi_reduction <add>, %415, %cst_66 [2] : vector<1x1x128xi32> to vector<1x1xi32>
    %417 = vector.shape_cast %416 : vector<1x1xi32> to vector<1x1x1xi32>
    %418 = arith.cmpi sge, %417, %53 : vector<1x1x1xi32>
    %419 = vector.broadcast %410 : vector<1x1x1xi32> to vector<1x1x128xi32>
    %420 = arith.cmpi sge, %54, %419 : vector<1x1x128xi32>
    %421 = arith.extui %420 : vector<1x1x128xi1> to vector<1x1x128xi32>
    %cst_67 = arith.constant dense<0> : vector<1x1xi32>
    %422 = vector.multi_reduction <add>, %421, %cst_67 [2] : vector<1x1x128xi32> to vector<1x1xi32>
    %423 = vector.shape_cast %422 : vector<1x1xi32> to vector<1x1x1xi32>
    %424 = arith.cmpi sge, %423, %53 : vector<1x1x1xi32>
    %425 = vector.broadcast %412 : vector<1x1x1xi32> to vector<1x1x128xi32>
    %426 = arith.cmpi sge, %54, %425 : vector<1x1x128xi32>
    %427 = arith.extui %426 : vector<1x1x128xi1> to vector<1x1x128xi32>
    %cst_68 = arith.constant dense<0> : vector<1x1xi32>
    %428 = vector.multi_reduction <add>, %427, %cst_68 [2] : vector<1x1x128xi32> to vector<1x1xi32>
    %429 = vector.shape_cast %428 : vector<1x1xi32> to vector<1x1x1xi32>
    %430 = arith.cmpi sge, %429, %53 : vector<1x1x1xi32>
    %431 = arith.select %418, %408, %406 : vector<1x1x1xi1>, vector<1x1x1xi32>
    %432 = arith.select %424, %410, %431 : vector<1x1x1xi1>, vector<1x1x1xi32>
    %433 = arith.select %430, %412, %432 : vector<1x1x1xi1>, vector<1x1x1xi32>
    %c2_i32 = arith.constant 2 : i32
    %434 = vector.broadcast %c2_i32 : i32 to vector<1x1x1xi32>
    %435 = arith.ori %433, %434 : vector<1x1x1xi32>
    %c4_i32 = arith.constant 4 : i32
    %436 = vector.broadcast %c4_i32 : i32 to vector<1x1x1xi32>
    %437 = arith.ori %433, %436 : vector<1x1x1xi32>
    %c6_i32 = arith.constant 6 : i32
    %438 = vector.broadcast %c6_i32 : i32 to vector<1x1x1xi32>
    %439 = arith.ori %433, %438 : vector<1x1x1xi32>
    %440 = vector.broadcast %435 : vector<1x1x1xi32> to vector<1x1x128xi32>
    %441 = arith.cmpi sge, %54, %440 : vector<1x1x128xi32>
    %442 = arith.extui %441 : vector<1x1x128xi1> to vector<1x1x128xi32>
    %cst_69 = arith.constant dense<0> : vector<1x1xi32>
    %443 = vector.multi_reduction <add>, %442, %cst_69 [2] : vector<1x1x128xi32> to vector<1x1xi32>
    %444 = vector.shape_cast %443 : vector<1x1xi32> to vector<1x1x1xi32>
    %445 = arith.cmpi sge, %444, %53 : vector<1x1x1xi32>
    %446 = vector.broadcast %437 : vector<1x1x1xi32> to vector<1x1x128xi32>
    %447 = arith.cmpi sge, %54, %446 : vector<1x1x128xi32>
    %448 = arith.extui %447 : vector<1x1x128xi1> to vector<1x1x128xi32>
    %cst_70 = arith.constant dense<0> : vector<1x1xi32>
    %449 = vector.multi_reduction <add>, %448, %cst_70 [2] : vector<1x1x128xi32> to vector<1x1xi32>
    %450 = vector.shape_cast %449 : vector<1x1xi32> to vector<1x1x1xi32>
    %451 = arith.cmpi sge, %450, %53 : vector<1x1x1xi32>
    %452 = vector.broadcast %439 : vector<1x1x1xi32> to vector<1x1x128xi32>
    %453 = arith.cmpi sge, %54, %452 : vector<1x1x128xi32>
    %454 = arith.extui %453 : vector<1x1x128xi1> to vector<1x1x128xi32>
    %cst_71 = arith.constant dense<0> : vector<1x1xi32>
    %455 = vector.multi_reduction <add>, %454, %cst_71 [2] : vector<1x1x128xi32> to vector<1x1xi32>
    %456 = vector.shape_cast %455 : vector<1x1xi32> to vector<1x1x1xi32>
    %457 = arith.cmpi sge, %456, %53 : vector<1x1x1xi32>
    %458 = arith.select %445, %435, %433 : vector<1x1x1xi1>, vector<1x1x1xi32>
    %459 = arith.select %451, %437, %458 : vector<1x1x1xi1>, vector<1x1x1xi32>
    %460 = arith.select %457, %439, %459 : vector<1x1x1xi1>, vector<1x1x1xi32>
    %c1_i32 = arith.constant 1 : i32
    %461 = vector.broadcast %c1_i32 : i32 to vector<1x1x1xi32>
    %462 = arith.ori %460, %461 : vector<1x1x1xi32>
    %463 = vector.broadcast %462 : vector<1x1x1xi32> to vector<1x1x128xi32>
    %464 = arith.cmpi sge, %54, %463 : vector<1x1x128xi32>
    %465 = arith.extui %464 : vector<1x1x128xi1> to vector<1x1x128xi32>
    %cst_72 = arith.constant dense<0> : vector<1x1xi32>
    %466 = vector.multi_reduction <add>, %465, %cst_72 [2] : vector<1x1x128xi32> to vector<1x1xi32>
    %467 = vector.shape_cast %466 : vector<1x1xi32> to vector<1x1x1xi32>
    %468 = arith.cmpi sge, %467, %53 : vector<1x1x1xi32>
    %469 = arith.select %468, %462, %460 : vector<1x1x1xi1>, vector<1x1x1xi32>
    %470 = tpu.bitcast %469 : vector<1x1x1xi32> -> vector<1x1x1xf32>
    %471 = vector.broadcast %470 : vector<1x1x1xf32> to vector<1x1x128xf32>
    %472 = arith.cmpf ogt, %46, %471 : vector<1x1x128xf32>
    %cst_73 = arith.constant 0.000000e+00 : f32
    %473 = vector.broadcast %cst_73 : f32 to vector<1x1x128xf32>
    %474 = arith.select %472, %46, %473 : vector<1x1x128xi1>, vector<1x1x128xf32>
    %cst_74 = arith.constant dense<0.000000e+00> : vector<1x1xf32>
    %475 = vector.multi_reduction <add>, %474, %cst_74 [2] : vector<1x1x128xf32> to vector<1x1xf32>
    %476 = vector.shape_cast %475 : vector<1x1xf32> to vector<1x1x1xf32>
    %477 = arith.extui %472 : vector<1x1x128xi1> to vector<1x1x128xi32>
    %478 = arith.sitofp %477 : vector<1x1x128xi32> to vector<1x1x128xf32>
    %cst_75 = arith.constant dense<0.000000e+00> : vector<1x1xf32>
    %479 = vector.multi_reduction <add>, %478, %cst_75 [2] : vector<1x1x128xf32> to vector<1x1xf32>
    %480 = vector.shape_cast %479 : vector<1x1xf32> to vector<1x1x1xf32>
    %481 = arith.sitofp %53 : vector<1x1x1xi32> to vector<1x1x1xf32>
    %482 = arith.subf %481, %480 : vector<1x1x1xf32>
    %483 = arith.mulf %482, %470 : vector<1x1x1xf32>
    %484 = arith.addf %476, %483 : vector<1x1x1xf32>
    %c0_i32_76 = arith.constant 0 : i32
    %485 = vector.broadcast %c0_i32_76 : i32 to vector<1x1x1xi32>
    %486 = arith.cmpi sgt, %53, %485 : vector<1x1x1xi32>
    %cst_77 = arith.constant 0.000000e+00 : f32
    %487 = vector.broadcast %cst_77 : f32 to vector<1x1x1xf32>
    %488 = arith.select %486, %484, %487 : vector<1x1x1xi1>, vector<1x1x1xf32>
    %cst_78 = arith.constant 0.000000e+00 : f32
    %489 = vector.broadcast %cst_78 : f32 to vector<1x1x128xf32>
    %490 = arith.select %4, %42, %489 : vector<1x1x128xi1>, vector<1x1x128xf32>
    %cst_79 = arith.constant dense<0.000000e+00> : vector<1x1xf32>
    %491 = vector.multi_reduction <add>, %490, %cst_79 [2] : vector<1x1x128xf32> to vector<1x1xf32>
    %492 = vector.shape_cast %491 : vector<1x1xf32> to vector<1x1x1xf32>
    %493 = arith.addf %492, %488 : vector<1x1x1xf32>
    %cst_80 = arith.constant dense<0.000000e+00> : vector<1x1xf32>
    %494 = vector.multi_reduction <add>, %493, %cst_80 [0] : vector<1x1x1xf32> to vector<1x1xf32>
    %495 = vector.shape_cast %494 : vector<1x1xf32> to vector<1x1x1xf32>
    %cst_81 = arith.constant dense<0.000000e+00> : vector<1x1xf32>
    %496 = vector.multi_reduction <add>, %48, %cst_81 [0] : vector<1x1x1xf32> to vector<1x1xf32>
    %497 = vector.shape_cast %496 : vector<1x1xf32> to vector<1x1x1xf32>
    %498 = tpu.iota {dimensions = array<i32: 2>} : vector<1x1x3xi32>
    %c0_i32_82 = arith.constant 0 : i32
    %499 = vector.broadcast %c0_i32_82 : i32 to vector<1x1x3xi32>
    %500 = arith.cmpi eq, %498, %499 : vector<1x1x3xi32>
    %c1_i32_83 = arith.constant 1 : i32
    %501 = vector.broadcast %c1_i32_83 : i32 to vector<1x1x3xi32>
    %502 = arith.cmpi eq, %498, %501 : vector<1x1x3xi32>
    %503 = vector.shape_cast %495 : vector<1x1x1xf32> to vector<1x1x1xf32>
    %504 = vector.broadcast %503 : vector<1x1x1xf32> to vector<1x1x3xf32>
    %505 = vector.shape_cast %497 : vector<1x1x1xf32> to vector<1x1x1xf32>
    %506 = vector.broadcast %505 : vector<1x1x1xf32> to vector<1x1x3xf32>
    %507 = arith.select %502, %504, %506 : vector<1x1x3xi1>, vector<1x1x3xf32>
    %508 = vector.shape_cast %25 : vector<1x1x1xf32> to vector<1x1x1xf32>
    %509 = vector.broadcast %508 : vector<1x1x1xf32> to vector<1x1x3xf32>
    %510 = arith.select %500, %509, %507 : vector<1x1x3xi1>, vector<1x1x3xf32>
    %c0_84 = arith.constant 0 : index
    %c0_85 = arith.constant 0 : index
    %c0_86 = arith.constant 0 : index
    %511 = vector.load %arg6[%c0_84, %c0_85, %c0_86] : memref<1x1x3xf32, #tpu.memory_space<vmem>>, vector<1x1x3xf32>
    tpu.vector_store %arg6[%c0_84, %c0_85, %c0_86], %510 {strides = array<i32>} : memref<1x1x3xf32, #tpu.memory_space<vmem>>, vector<1x1x3xf32>,
    return
  }
  func.func @transform_0(%arg0: i32) -> (i32, i32, i32) {
    %c0_i32 = arith.constant 0 : i32
    %c0_i32_0 = arith.constant 0 : i32
    %c0_i32_1 = arith.constant 0 : i32
    return %arg0, %c0_i32, %c0_i32_0 : i32, i32, i32
  }
  func.func @transform_1(%arg0: i32) -> (i32, i32, i32) {
    %c0_i32 = arith.constant 0 : i32
    %c0_i32_0 = arith.constant 0 : i32
    %c0_i32_1 = arith.constant 0 : i32
    return %arg0, %c0_i32, %c0_i32_0 : i32, i32, i32
  }
  func.func @transform_2(%arg0: i32) -> (i32, i32, i32) {
    %c0_i32 = arith.constant 0 : i32
    %c0_i32_0 = arith.constant 0 : i32
    %c0_i32_1 = arith.constant 0 : i32
    return %arg0, %c0_i32, %c0_i32_0 : i32, i32, i32
  }
  func.func @transform_3(%arg0: i32) -> (i32, i32, i32) {
    %c0_i32 = arith.constant 0 : i32
    %c0_i32_0 = arith.constant 0 : i32
    %c0_i32_1 = arith.constant 0 : i32
    return %arg0, %c0_i32, %c0_i32_0 : i32, i32, i32
  }
  func.func @transform_4(%arg0: i32) -> (i32, i32, i32) {
    %c0_i32 = arith.constant 0 : i32
    %c0_i32_0 = arith.constant 0 : i32
    %c0_i32_1 = arith.constant 0 : i32
    return %arg0, %c0_i32, %c0_i32_0 : i32, i32, i32
  }
  func.func @transform_5(%arg0: i32) -> (i32, i32, i32) {
    %c0_i32 = arith.constant 0 : i32
    %c0_i32_0 = arith.constant 0 : i32
    %c0_i32_1 = arith.constant 0 : i32
    return %arg0, %c0_i32, %c0_i32_0 : i32, i32, i32
  }
}

</mosaic_0001>

<bundles_post_ra>
// kernel: tpu_custom_call.1
= control target key start
LH: loop header
LB: loop body
LE: loop exit
PB: predicated region body
PF: predicated region fallthrough
CT: control target
= control target key end

     0   :  { %s2204_s0 = inlined_call_operand.hbm [shape: f32[2,4,128], index: 0, kind: input, shape index: {}]   ;;  %s2205_s1 = inlined_call_operand.hbm [shape: f32[2,4,128], index: 1, kind: input, shape index: {}]   ;;  %s2206_s2 = inlined_call_operand.hbm [shape: f32[2,2,128], index: 2, kind: input, shape index: {}]   ;;  %s2207_s3 = inlined_call_operand.vmem [shape: s32[2,1,128], index: 3, kind: input, shape index: {}]   ;;  %s2208_s4 = inlined_call_operand.hbm [shape: f32[2,1,128], index: 4, kind: input, shape index: {}]   ;;  %s2209_s5 = inlined_call_operand.hbm [shape: f32[2,1,3], index: 5, kind: output, shape index: {}]  }
   0x1   :  { %2214 = sst [smem:[#allocation19_spill]] %s2205_s1 }
   0x2   :  { %10 = vsyncpa [#allocation3], 0 }
   0x3   :  { %12 = vsyncpa [#allocation3 + $0x1], 0 }
   0x4   :  { %13 = vsyncpa [#allocation6], 0 }
   0x5   :  { %15 = vsyncpa [#allocation6 + $0x1], 0 }
   0x6   :  { %16 = vsyncpa [#allocation9], 0 }
   0x7   :  { %18 = vsyncpa [#allocation9 + $0x1], 0 }
   0x8   :  { %19 = vsyncpa [#allocation4], 0 }
   0x9   :  { %21 = vsyncpa [#allocation4 + $0x1], 0  ;;  %s1764_s18 = smov 0   ;;  %s1766_s19 = smov 0  }
   0xa   :  { %s1768_s20 = smov 0   ;;  %s1770_s21 = smov 0  }
   0xb LB: > { %2215 = sst [smem:[#allocation15_spill]] %s1726_s20  ;;  %s1785_s22 = sadd.s32 4294967295, %s1730_s21   ;;  %s1730_s21 = sphi %s1770_s21, %s2226_s21   ;;  %s1726_s20 = sphi %s1768_s20, %s2228_s20   ;;  %s1722_s19 = sphi %s1766_s19, %s2230_s19   ;;  %s1718_s18 = sphi %s1764_s18, %s2229_s18  }
   0xc   : > { %s1445_s23 = sadd.s32 4294967294, %s1730_s21   ;;  %s1789_s24 = sadd.s32 1, %s1730_s21  }
   0xd   : > { %2216 = sst [smem:[#allocation16_spill]] %s1789_s24  ;;  %s34_s25 = sadd.s32 1, %s1726_s20 }
   0xe   : > { %s31_s26 = ssub.s32 %s1730_s21, %s1789_s24  ;;  %p41_p0 = scmp.ne.s32.totalorder %s1726_s20, %s1722_s19 }
   0xf   : > { %p32_p1 = scmp.eq.s32.totalorder %s31_s26, 0  ;;  %p42_p2 = scmp.eq.s32.totalorder %s1730_s21, 0 }
  0x10   : > { %p47_p3 = scmp.ne.s32.totalorder %s1722_s19, %s1718_s18  ;;  %p48_p4 = scmp.eq.s32.totalorder %s1785_s22, 0 }
  0x11   : > { %s1801_s27 = scalar_select %p32_p1, %s1726_s20, %s34_s25  }
  0x12   : > { %p43_p5 = por %p42_p2, %p41_p0  ;;  %p1803_p6 = por %p48_p4, %p47_p3 }
  0x13   : > { %2217 = sst [smem:[#allocation17_spill]] %s1801_s27  ;;  %p175_p7 = scmp.eq.s32.totalorder %s1785_s22, 1 }
  0x14   : > { %p181_p8 = scmp.eq.s32.totalorder %s1445_s23, 1  ;;  %p1447_p9 = scmp.ge.s32.totalorder %s1730_s21, 2 }
  0x15   : > { %p1495_p10 = scmp.lt.s32.totalorder %s1730_s21, 2  ;;  %p1810_p11 = por %p175_p7, %p41_p0 }
  0x16   : > { %p1814_p12 = por %p181_p8, %p47_p3  ;;  %s1819_s6 = sand.u32 1, %s1726_s20  }
  0x17   : > { %s1449_s7 = sshll.u32 %s1730_s21, 2  ;;  %s1448_s8 = sshll.u32 %s1819_s6, 2 }
  0x18   : > { %s2220_s30 = scalar_select %p1814_p12, 1, 0 }
  0x19   : > { %p1823_p13 = pnand %p1495_p10, %p43_p5  ;;  %s220_s10 = sand.u32 1, %s1730_s21  }
  0x1a   : > { %2221 = sst [smem:[#allocation18_spill]] %s2220_s30  ;;  %s224_s14 = scalar_lea.vmem [#allocation5], %s1448_s8 }
  0x1b   : > { %s2223_s1 = sld [smem:[#allocation19_spill]]  ;;  %s232_s15 = sshll.u32 %s224_s14, 4  ;;  %s233_s15 = int_to_ptr.vmem [resolvable:$true] %s232_s15 }
  0x1c   : > { %p1454_p0 = scmp.ge.s32.totalorder %s1730_s21, 1  ;;  %s1834_s17 = scalar_lea.sflag [#allocation6], %s220_s10 }
  0x1d   : > { %p1540_p2 = pneg %p1823_p13 }
  0x21   : > { %s228_s13 = scalar_lea.hbm %s2223_s1, %s1449_s7  ;;  %s1543_s12 = scalar_lea.hbm %s2223_s1, 8 }
  0x22   : > { %s230_s16 = sshll.u32 %s228_s13, 4  ;;  %s231_s16 = int_to_ptr.hbm [resolvable:$true] %s230_s16 }
  0x23   : > { %s1536_s23 = sshra.s32 %s231_s16, 4  ;;  %s1537_s23 = int_to_ptr.hbm [resolvable:$true] %s1536_s23 }
  0x24   : > { %s1538_s25 = scalar_lea.hbm %s1537_s23, 4  ;;  %p1544_p5 = scmp.lt.s32.totalorder %s1537_s23, %s2223_s1 }
  0x25   : > { %p1539_p1 = scmp.ne.s32.totalorder %s1537_s23, %s1538_s25  ;;  %p1545_p7 = scmp.lt.s32.totalorder %s1543_s12, %s1538_s25 }
  0x27   : > { %p1541_p3 = pnand %p1540_p2, %p1539_p1  ;;  %p1546_p8 = por %p1545_p7, %p1544_p5 }
  0x29   : > { %p1542_p4 = pneg %p1541_p3 }
  0x2b   : > { %p1547_p10 = pnand %p1546_p8, %p1542_p4 }
  0x2d   : > { %1550 = shalt.err (!%p1547_p10)
}
  0x2e   : > { %1484 = dma.hbm_to_vmem [thread:$0]  (!%p1823_p13), %s231_s16, 64, %s233_s15, %s1834_s17  }
  0x2f   : > { %p279_p1 = scmp.lt.s32.totalorder %s1730_s21, 3  ;;  %s209_s11 = scalar_lea.hbm %s2204_s0, %s1449_s7 }
  0x30   : > { %s211_s25 = sshll.u32 %s209_s11, 4  ;;  %s205_s12 = scalar_lea.vmem [#allocation2], %s1448_s8  ;;  %s212_s25 = int_to_ptr.hbm [resolvable:$true] %s211_s25 }
  0x31   : > { %p1856_p3 = pnand %p1454_p0, %p279_p1  ;;  %s213_s13 = sshll.u32 %s205_s12, 4  ;;  %s214_s13 = int_to_ptr.vmem [resolvable:$true] %s213_s13 }
  0x32   : > { %s1452_s14 = sshll.u32 %s1819_s6, 1  ;;  %s202_s1 = scalar_lea.sflag [#allocation3], %s1819_s6 }
  0x33   : > { %s1566_s27 = sshra.s32 %s212_s25, 4  ;;  %s1573_s10 = scalar_lea.hbm %s2204_s0, 8  ;;  %s1567_s27 = int_to_ptr.hbm [resolvable:$true] %s1566_s27 }
  0x34   : > { %s1568_s15 = scalar_lea.hbm %s1567_s27, 4  ;;  %p1574_p0 = scmp.lt.s32.totalorder %s1567_s27, %s2204_s0 }
  0x35   : > { %p1569_p4 = scmp.ne.s32.totalorder %s1567_s27, %s1568_s15  ;;  %p1575_p8 = scmp.lt.s32.totalorder %s1573_s10, %s1568_s15 }
  0x37   : > { %p1571_p5 = pnand %p1569_p4, %p1540_p2  ;;  %p1576_p10 = por %p1575_p8, %p1574_p0 }
  0x39   : > { %p1572_p7 = pneg %p1571_p5 }
  0x3b   : > { %p1577_p1 = pnand %p1576_p10, %p1572_p7 }
  0x3d   : > { %1580 = shalt.err (!%p1577_p1)
}
  0x3e   : > { %1481 = dma.hbm_to_vmem [thread:$0]  (!%p1823_p13), %s212_s25, 64, %s214_s13, %s202_s1  }
  0x3f   : > { %s1453_s8 = sshll.u32 %s1730_s21, 1  ;;  %s243_s7 = scalar_lea.vmem [#allocation7], %s1452_s14 }
  0x40   : > { %s247_s24 = scalar_lea.hbm %s2206_s2, %s1453_s8  ;;  %s251_s16 = sshll.u32 %s243_s7, 4  ;;  %s252_s16 = int_to_ptr.vmem [resolvable:$true] %s251_s16 }
  0x41   : > { %s249_s30 = sshll.u32 %s247_s24, 4  ;;  %s1603_s25 = scalar_lea.hbm %s2206_s2, 4  ;;  %s250_s30 = int_to_ptr.hbm [resolvable:$true] %s249_s30 }
  0x42   : > { %s1596_s27 = sshra.s32 %s250_s30, 4  ;;  %s1597_s27 = int_to_ptr.hbm [resolvable:$true] %s1596_s27 }
  0x43   : > { %s1598_s15 = scalar_lea.hbm %s1597_s27, 2  ;;  %p1604_p0 = scmp.lt.s32.totalorder %s1597_s27, %s2206_s2 }
  0x44   : > { %p1599_p4 = scmp.ne.s32.totalorder %s1597_s27, %s1598_s15  ;;  %p1605_p8 = scmp.lt.s32.totalorder %s1603_s25, %s1598_s15 }
  0x46   : > { %p1601_p5 = pnand %p1599_p4, %p1540_p2  ;;  %p1606_p10 = por %p1605_p8, %p1604_p0 }
  0x48   : > { %p1602_p7 = pneg %p1601_p5 }
  0x4a   : > { %p1607_p1 = pnand %p1606_p10, %p1602_p7 }
  0x4c   : > { %1610 = shalt.err (!%p1607_p1)
}
  0x4d   : > { %1487 = dma.hbm_to_vmem [thread:$0]  (!%p1823_p13), %s250_s30, 32, %s252_s16, %s1834_s17  }
  0x4e   : > { %s270_s26 = scalar_lea.hbm %s2208_s4, %s1730_s21  ;;  %s267_s8 = scalar_lea.vmem [#allocation8], %s1819_s6 }
  0x4f   : > { %s272_s11 = sshll.u32 %s270_s26, 4  ;;  %s274_s12 = sshll.u32 %s267_s8, 4  ;;  %s273_s11 = int_to_ptr.hbm [resolvable:$true] %s272_s11  ;;  %s275_s12 = int_to_ptr.vmem [resolvable:$true] %s274_s12 }
  0x50   : > { %s265_s7 = scalar_lea.sflag [#allocation9], %s1819_s6  ;;  %s1626_s27 = sshra.s32 %s273_s11, 4  ;;  %s1627_s27 = int_to_ptr.hbm [resolvable:$true] %s1626_s27 }
  0x51   : > { %s1628_s15 = scalar_lea.hbm %s1627_s27, 1  ;;  %s1633_s17 = scalar_lea.hbm %s2208_s4, 2 }
  0x52   : > { %p1629_p4 = scmp.ne.s32.totalorder %s1627_s27, %s1628_s15  ;;  %p1634_p0 = scmp.lt.s32.totalorder %s1627_s27, %s2208_s4 }
  0x53   : > { %p1635_p8 = scmp.lt.s32.totalorder %s1633_s17, %s1628_s15 }
  0x54   : > { %p1631_p5 = pnand %p1629_p4, %p1540_p2 }
  0x55   : > { %p1636_p10 = por %p1635_p8, %p1634_p0 }
  0x56   : > { %p1632_p7 = pneg %p1631_p5 }
  0x58   : > { %p1637_p1 = pnand %p1636_p10, %p1632_p7 }
  0x5a   : > { %1640 = shalt.err (!%p1637_p1)
}
  0x5b   : > { %1490 = dma.hbm_to_vmem [thread:$0]  (!%p1823_p13), %s273_s11, 16, %s275_s12, %s265_s7  }
  0x5c   : > { %283 = sbr.rel (%p1856_p3) target bundleno = 2538 (0x9ea), region = 40  ;;  %s1911_s6 = sand.u32 (!%p1856_p3), 1, %s1722_s19  }
  0x5d   : > { %s1455_s25 = sshll.u32 (!%p1856_p3), %s1911_s6, 2  ;;  %s286_s13 = scalar_lea.sflag (!%p1856_p3), [#allocation3], %s1911_s6 }
  0x5e   : > { %s1915_s20 = scalar_lea.vmem (!%p1856_p3), [#allocation2], %s1455_s25 }
  0x61   : > { %1701 = dma.done.wait (%p1803_p6), %s286_s13, 64  }
  0x62   : > { %1703 = vsyncadd (%p1803_p6), %s286_s13, 4294967232  ;;  %s295_s9 = sand.u32 1, %s1785_s22   ;;  %s1922_s24 = scalar_lea.vmem [#allocation5], %s1455_s25 }
  0x63   : > { %s296_s23 = scalar_lea.sflag [#allocation6], %s295_s9 }
  0x64   : > { %1705 = dma.done.wait (%p1803_p6), %s296_s23, 96  }
  0x65   : > { %1707 = vsyncadd (%p1803_p6), %s296_s23, 4294967200  ;;  %s1457_s14 = sshll.u32 %s1911_s6, 1  ;;  %s316_s11 = scalar_lea.sflag [#allocation9], %s1911_s6 }
  0x66   : > { %s309_s26 = scalar_lea.vmem [#allocation7], %s1457_s14  ;;  %s318_s8 = scalar_lea.vmem [#allocation8], %s1911_s6 }
  0x67   : > { %1709 = dma.done.wait (%p1803_p6), %s316_s11, 16  }
  0x68   : > { %1711 = vsyncadd (%p1803_p6), %s316_s11, 4294967280  ;;  %p362_p13 = scmp.lt.s32.totalorder %s1785_s22, 1  ;;  %vm394_vm0 = vcmask 1041408   ;;  %v1940_v0 = vld [vmem:[%s318_s8] sm:$0x1]  ;;  %vm389_vm1 = vcmask 1040384   ;;  %v415_v9 = vlaneseq  ;;  %s1304_s30 = scalar_lea.hbm %s2209_s5, %s1785_s22 }
  0x69   : > { %vm368_vm2 = vcmp.gt.f32.partialorder %v1940_v0, 0.5  ;;  %v365_v1 = vld [vmem:[%s309_s26] sm:$0x3]  ;;  %v1732_v2 = vmov 0.0   ;;  %v1733_v39 = vmov 0   ;;  %s361_s17 = scalar_lea.vmem [#allocation10], %s1911_s6 }
  0x6a   : > { %s363_s12 = scalar_select %p362_p13, %s1785_s22, 1  ;;  %v1946_v3 = vsel %vm368_vm2, 1.0, %v1732_v2  ;;  %v395_v4 = vsel %vm394_vm0, %v365_v1, -inf  ;;  %v416_v12 = vshrl.u32 %v415_v9, 7 }
  0x6b   : > { %v430_v5 = vsel %vm389_vm1, %v1946_v3, 0.0  ;;  %v396_v6 = vrot.slane %v395_v4, 4  ;;  %s1306_s16 = sshll.u32 %s361_s17, 4  ;;  %s1308_s1 = sshll.u32 %s1304_s30, 4  ;;  %s1307_s16 = int_to_ptr.vmem [resolvable:$true] %s1306_s16  ;;  %s1309_s1 = int_to_ptr.hbm [resolvable:$true] %s1308_s1 }
  0x6c   : > { %s364_s15 = scalar_lea.vmem %s2207_s3, %s363_s12  ;;  %431 = vadd.xlane.f32.xlu0 %v430_v5  ;;  %s1296_s22 = scalar_lea.sflag [#allocation4], %s1911_s6 }
  0x6d   : > { %v397_v7 = vmax.f32 %v395_v4, %v396_v6  ;;  %v1531_v14 = vld [vmem:[%s364_s15] ss:$0 sm:$0xff]  ;;  %s1670_s25 = sshra.s32 %s1309_s1, 4  ;;  %s1676_s23 = scalar_lea.hbm %s2209_s5, 2  ;;  %s1671_s25 = int_to_ptr.hbm [resolvable:$true] %s1670_s25 }
  0x6e   : > { %vm418_vm3 = vcmp.eq.s32.totalorder %v416_v12, %v1531_v14  ;;  %s1672_s13 = scalar_lea.hbm %s1671_s25, 1  ;;  %p1677_p4 = scmp.lt.s32.totalorder %s1671_s25, %s2209_s5 }
  0x6f   : > { %v398_v8 = vrot.slane %v397_v7, 2  ;;  %v419_v17 = vsel %vm418_vm3, %v365_v1, 0.0  ;;  %p1673_p6 = scmp.ne.s32.totalorder %s1671_s25, %s1672_s13  ;;  %p1678_p5 = scmp.lt.s32.totalorder %s1676_s23, %s1672_s13 }
  0x70   : > { %v420_v18 = vsel %vm394_vm0, %v419_v17, 0.0 }
  0x71   : > { %v399_v10 = vmax.f32 %v397_v7, %v398_v8  ;;  %v421_v21 = vrot.slane %v420_v18, 4  ;;  %p1674_p2 = pnand %p1673_p6, %p1810_p11  ;;  %p1679_p7 = por %p1678_p5, %p1677_p4 }
  0x73   : > { %v400_v11 = vrot.slane %v399_v10, 1  ;;  %v422_v24 = vadd.f32 %v421_v21, %v420_v18  ;;  %p1675_p3 = pneg %p1674_p2 }
  0x75   : > { %v401_v13 = vmax.f32 %v399_v10, %v400_v11  ;;  %v423_v27 = vrot.slane %v422_v24, 2  ;;  %p1680_p0 = pnand %p1679_p7, %p1675_p3 }
  0x77   : > { %v402_v15 = vsub.f32 %v365_v1, %v401_v13  ;;  %v424_v30 = vadd.f32 %v423_v27, %v422_v24 }
  0x79   : > { %v403_v16 = vmul.f32 1.442695, %v402_v15  ;;  %v425_v31 = vrot.slane %v424_v30, 1 }
  0x7b   : > { %1532 = vpow2.f32 %v403_v16  ;;  %v426_v34 = vadd.f32 %v425_v31, %v424_v30 }
  0x81   : > { %v1533_v19 = vpop.eup %1532 }
  0x82   : > { %v405_v20 = vsel %vm394_vm0, %v1533_v19, 0.0 }
  0x83   : > { %v406_v22 = vrot.slane %v405_v20, 4 }
  0x85   : > { %v407_v23 = vadd.f32 %v406_v22, %v405_v20 }
  0x87   : > { %v408_v25 = vrot.slane %v407_v23, 2 }
  0x89   : > { %v409_v26 = vadd.f32 %v408_v25, %v407_v23 }
  0x8b   : > { %v410_v28 = vrot.slane %v409_v26, 1 }
  0x8d   : > { %v411_v29 = vadd.f32 %v410_v28, %v409_v26 }
  0x8f   : > { %1534 = vlog2.f32 %v411_v29 }
  0x95   : > { %v1535_v32 = vpop.eup %1534 }
  0x96   : > { %v413_v33 = vmul.f32 0.6931472, %v1535_v32 }
  0x98   : > { %v414_v35 = vadd.f32 %v413_v33, %v401_v13 }
  0x9a   : > { %v1954_v36 = vsub.f32 %v414_v35, %v426_v34 }
  0x9c   : > { %v428_v37 = vsel %vm368_vm2, 0.0, %v1954_v36 }
  0x9d   : > { %v1959_v38 = vmax.f32 %v428_v37, 0.0 }
  0x9f   : > { %vm470_vm4 = vcmp.ge.s32.totalorder %v1959_v38, 1610612736  ;;  %vm454_vm5 = vcmp.ge.s32.totalorder %v1959_v38, 1073741824  ;;  %vm438_vm6 = vcmp.ge.s32.totalorder %v1959_v38, 536870912 }
  0xa0   : > { %v471_v40 = vsel %vm470_vm4, 1, %v1733_v39  ;;  %v455_v41 = vsel %vm454_vm5, 1, %v1733_v39  ;;  %v439_v42 = vsel %vm438_vm6, 1, %v1733_v39 }
  0xa1   : > { %v472_v43 = vsel %vm389_vm1, %v471_v40, 0  ;;  %v456_v44 = vsel %vm389_vm1, %v455_v41, 0  ;;  %v440_v45 = vsel %vm389_vm1, %v439_v42, 0 }
  0xa2   : > { %v474_v46 = vshrl.u32 %v472_v43, 16  ;;  %v458_v47 = vshrl.u32 %v456_v44, 16  ;;  %v442_v48 = vshrl.u32 %v440_v45, 16  ;;  %v457_v52 = vand.u32 65535, %v456_v44 }
  0xa3   : > { %v441_v53 = vand.u32 65535, %v440_v45  ;;  %v473_v54 = vand.u32 65535, %v472_v43 }
  0xa4   : > { %v476_v49 = vcvt.s32.f32 %v474_v46  ;;  %v460_v50 = vcvt.s32.f32 %v458_v47  ;;  %v444_v51 = vcvt.s32.f32 %v442_v48  ;;  %v459_v55 = vcvt.s32.f32 %v457_v52 }
  0xa5   : > { %v443_v56 = vcvt.s32.f32 %v441_v53  ;;  %v475_v57 = vcvt.s32.f32 %v473_v54 }
  0xa6   : > { %479 = vadd.xlane.f32.xlu2 %v476_v49  ;;  %463 = vadd.xlane.f32.xlu1 %v460_v50 }
  0xa7   : > { %447 = vadd.xlane.f32.xlu0 %v444_v51 }
  0xae   : > { %461 = vadd.xlane.f32.xlu2 %v459_v55  ;;  %445 = vadd.xlane.f32.xlu1 %v443_v56 }
  0xaf   : > { %477 = vadd.xlane.f32.xlu0 %v475_v57 }
  0xdf   : > { %v1970_v58 = vpop.xlane.xlu0 %431 }
  0xe0   : > { %v1464_v59 = vceil.f32 %v1970_v58  ;;  %v1465_v60 = vfloor.f32 %v1970_v58  ;;  %vm1463_vm7 = vcmp.lt.s32.totalorder %v1970_v58, 0 }
  0xe2   : > { %v1466_v61 = vsel %vm1463_vm7, %v1464_v59, %v1465_v60 }
  0xe3   : > { %v1467_v62 = vcvt.f32.s32 %v1466_v61 }
  0xe5   : > { %v434_v5 = vmul.u32 3, %v1467_v62 }
  0xe7   : > { %vm435_vm8 = vcmp.lt.s32.totalorder %v434_v5, 127 }
  0xe8   : > { %v1975_v21 = vsel %vm435_vm8, %v434_v5, 127 }
 0x119   : > { %v480_v63 = vpop.xlane.xlu2 %479  ;;  %v464_v1 = vpop.xlane.xlu1 %463 }
 0x11a   : > { %v448_v4 = vpop.xlane.xlu0 %447  ;;  %v466_v6 = vcvt.f32.s32 %v464_v1  ;;  %v482_v8 = vcvt.f32.s32 %v480_v63 }
 0x11b   : > { %v450_v7 = vcvt.f32.s32 %v448_v4 }
 0x11c   : > { %v467_v12 = vshll.u32 %v466_v6, 16  ;;  %v483_v17 = vshll.u32 %v482_v8, 16 }
 0x11d   : > { %v451_v13 = vshll.u32 %v450_v7, 16 }
 0x121   : > { %v462_v10 = vpop.xlane.xlu2 %461  ;;  %v446_v11 = vpop.xlane.xlu1 %445 }
 0x122   : > { %v465_v14 = vcvt.f32.s32 %v462_v10  ;;  %v478_v15 = vpop.xlane.xlu0 %477  ;;  %v449_v16 = vcvt.f32.s32 %v446_v11 }
 0x123   : > { %v481_v18 = vcvt.f32.s32 %v478_v15 }
 0x124   : > { %v468_v19 = vadd.s32 %v467_v12, %v465_v14  ;;  %v452_v20 = vadd.s32 %v451_v13, %v449_v16 }
 0x125   : > { %v484_v22 = vadd.s32 %v483_v17, %v481_v18 }
 0x126   : > { %vm469_vm9 = vcmp.ge.s32.totalorder %v468_v19, %v1975_v21  ;;  %vm453_vm10 = vcmp.ge.s32.totalorder %v452_v20, %v1975_v21 }
 0x127   : > { %v486_v23 = vsel %vm453_vm10, 536870912, %v1733_v39  ;;  %vm485_vm11 = vcmp.ge.s32.totalorder %v484_v22, %v1975_v21 }
 0x128   : > { %v487_v24 = vsel %vm469_vm9, 1073741824, %v486_v23 }
 0x129   : > { %v488_v25 = vsel %vm485_vm11, 1610612736, %v487_v24 }
 0x12a   : > { %v490_v26 = vor.u32 268435456, %v488_v25  ;;  %v489_v27 = vor.u32 134217728, %v488_v25  ;;  %v491_v28 = vor.u32 402653184, %v488_v25 }
 0x12c   : > { %vm508_vm12 = vcmp.ge.s32.totalorder %v1959_v38, %v490_v26  ;;  %vm492_vm13 = vcmp.ge.s32.totalorder %v1959_v38, %v489_v27  ;;  %vm524_vm14 = vcmp.ge.s32.totalorder %v1959_v38, %v491_v28 }
 0x12d   : > { %v509_v29 = vsel %vm508_vm12, 1, %v1733_v39  ;;  %v493_v30 = vsel %vm492_vm13, 1, %v1733_v39  ;;  %v525_v37 = vsel %vm524_vm14, 1, %v1733_v39 }
 0x12e   : > { %v510_v31 = vsel %vm389_vm1, %v509_v29, 0  ;;  %v494_v32 = vsel %vm389_vm1, %v493_v30, 0  ;;  %v526_v43 = vsel %vm389_vm1, %v525_v37, 0 }
 0x12f   : > { %v512_v33 = vshrl.u32 %v510_v31, 16  ;;  %v496_v34 = vshrl.u32 %v494_v32, 16  ;;  %v495_v35 = vand.u32 65535, %v494_v32  ;;  %v511_v44 = vand.u32 65535, %v510_v31 }
 0x130   : > { %v528_v45 = vshrl.u32 %v526_v43, 16  ;;  %v527_v46 = vand.u32 65535, %v526_v43 }
 0x131   : > { %v514_v40 = vcvt.s32.f32 %v512_v33  ;;  %v498_v41 = vcvt.s32.f32 %v496_v34  ;;  %v497_v42 = vcvt.s32.f32 %v495_v35  ;;  %v513_v47 = vcvt.s32.f32 %v511_v44 }
 0x132   : > { %v530_v48 = vcvt.s32.f32 %v528_v45  ;;  %v529_v49 = vcvt.s32.f32 %v527_v46 }
 0x133   : > { %517 = vadd.xlane.f32.xlu2 %v514_v40  ;;  %501 = vadd.xlane.f32.xlu1 %v498_v41 }
 0x134   : > { %499 = vadd.xlane.f32.xlu0 %v497_v42 }
 0x13b   : > { %515 = vadd.xlane.f32.xlu2 %v513_v47  ;;  %533 = vadd.xlane.f32.xlu1 %v530_v48 }
 0x13c   : > { %531 = vadd.xlane.f32.xlu0 %v529_v49 }
 0x1a6   : > { %v518_v50 = vpop.xlane.xlu2 %517  ;;  %v502_v51 = vpop.xlane.xlu1 %501 }
 0x1a7   : > { %v504_v52 = vcvt.f32.s32 %v502_v51  ;;  %v500_v53 = vpop.xlane.xlu0 %499  ;;  %v520_v56 = vcvt.f32.s32 %v518_v50 }
 0x1a8   : > { %v503_v55 = vcvt.f32.s32 %v500_v53 }
 0x1a9   : > { %v505_v54 = vshll.u32 %v504_v52, 16  ;;  %v521_v61 = vshll.u32 %v520_v56, 16 }
 0x1ab   : > { %v506_v57 = vadd.s32 %v505_v54, %v503_v55 }
 0x1ad   : > { %vm507_vm15 = vcmp.ge.s32.totalorder %v506_v57, %v1975_v21 }
 0x1ae   : > { %v516_v59 = vpop.xlane.xlu2 %515  ;;  %v534_v60 = vpop.xlane.xlu1 %533  ;;  %v540_v7 = vsel %vm507_vm15, %v489_v27, %v488_v25 }
 0x1af   : > { %v519_v62 = vcvt.f32.s32 %v516_v59  ;;  %v536_v63 = vcvt.f32.s32 %v534_v60  ;;  %v532_v1 = vpop.xlane.xlu0 %531 }
 0x1b0   : > { %v535_v6 = vcvt.f32.s32 %v532_v1 }
 0x1b1   : > { %v522_v4 = vadd.s32 %v521_v61, %v519_v62  ;;  %v537_v5 = vshll.u32 %v536_v63, 16 }
 0x1b3   : > { %vm523_vm0 = vcmp.ge.s32.totalorder %v522_v4, %v1975_v21  ;;  %v538_v8 = vadd.s32 %v537_v5, %v535_v6 }
 0x1b4   : > { %v541_v10 = vsel %vm523_vm0, %v490_v26, %v540_v7 }
 0x1b5   : > { %vm539_vm3 = vcmp.ge.s32.totalorder %v538_v8, %v1975_v21 }
 0x1b6   : > { %v542_v11 = vsel %vm539_vm3, %v491_v28, %v541_v10 }
 0x1b7   : > { %v544_v12 = vor.u32 67108864, %v542_v11  ;;  %v543_v13 = vor.u32 33554432, %v542_v11  ;;  %v545_v14 = vor.u32 100663296, %v542_v11 }
 0x1b9   : > { %vm562_vm4 = vcmp.ge.s32.totalorder %v1959_v38, %v544_v12  ;;  %vm546_vm5 = vcmp.ge.s32.totalorder %v1959_v38, %v543_v13  ;;  %vm578_vm6 = vcmp.ge.s32.totalorder %v1959_v38, %v545_v14 }
 0x1ba   : > { %v563_v15 = vsel %vm562_vm4, 1, %v1733_v39  ;;  %v547_v16 = vsel %vm546_vm5, 1, %v1733_v39  ;;  %v579_v23 = vsel %vm578_vm6, 1, %v1733_v39 }
 0x1bb   : > { %v564_v17 = vsel %vm389_vm1, %v563_v15, 0  ;;  %v548_v18 = vsel %vm389_vm1, %v547_v16, 0  ;;  %v580_v27 = vsel %vm389_vm1, %v579_v23, 0 }
 0x1bc   : > { %v566_v19 = vshrl.u32 %v564_v17, 16  ;;  %v550_v20 = vshrl.u32 %v548_v18, 16  ;;  %v549_v22 = vand.u32 65535, %v548_v18  ;;  %v565_v28 = vand.u32 65535, %v564_v17 }
 0x1bd   : > { %v582_v29 = vshrl.u32 %v580_v27, 16  ;;  %v581_v30 = vand.u32 65535, %v580_v27 }
 0x1be   : > { %v568_v24 = vcvt.s32.f32 %v566_v19  ;;  %v552_v25 = vcvt.s32.f32 %v550_v20  ;;  %v551_v26 = vcvt.s32.f32 %v549_v22  ;;  %v567_v31 = vcvt.s32.f32 %v565_v28 }
 0x1bf   : > { %v584_v32 = vcvt.s32.f32 %v582_v29  ;;  %v583_v33 = vcvt.s32.f32 %v581_v30 }
 0x1c0   : > { %571 = vadd.xlane.f32.xlu2 %v568_v24  ;;  %555 = vadd.xlane.f32.xlu1 %v552_v25 }
 0x1c1   : > { %553 = vadd.xlane.f32.xlu0 %v551_v26 }
 0x1c8   : > { %569 = vadd.xlane.f32.xlu2 %v567_v31  ;;  %587 = vadd.xlane.f32.xlu1 %v584_v32 }
 0x1c9   : > { %585 = vadd.xlane.f32.xlu0 %v583_v33 }
 0x233   : > { %v572_v34 = vpop.xlane.xlu2 %571  ;;  %v556_v35 = vpop.xlane.xlu1 %555 }
 0x234   : > { %v558_v37 = vcvt.f32.s32 %v556_v35  ;;  %v554_v40 = vpop.xlane.xlu0 %553  ;;  %v574_v43 = vcvt.f32.s32 %v572_v34 }
 0x235   : > { %v557_v42 = vcvt.f32.s32 %v554_v40 }
 0x236   : > { %v559_v41 = vshll.u32 %v558_v37, 16  ;;  %v575_v47 = vshll.u32 %v574_v43, 16 }
 0x238   : > { %v560_v44 = vadd.s32 %v559_v41, %v557_v42 }
 0x23a   : > { %vm561_vm7 = vcmp.ge.s32.totalorder %v560_v44, %v1975_v21 }
 0x23b   : > { %v570_v45 = vpop.xlane.xlu2 %569  ;;  %v588_v46 = vpop.xlane.xlu1 %587  ;;  %v594_v54 = vsel %vm561_vm7, %v543_v13, %v542_v11 }
 0x23c   : > { %v573_v48 = vcvt.f32.s32 %v570_v45  ;;  %v590_v49 = vcvt.f32.s32 %v588_v46  ;;  %v586_v50 = vpop.xlane.xlu0 %585 }
 0x23d   : > { %v589_v53 = vcvt.f32.s32 %v586_v50 }
 0x23e   : > { %v576_v51 = vadd.s32 %v575_v47, %v573_v48  ;;  %v591_v52 = vshll.u32 %v590_v49, 16 }
 0x240   : > { %vm577_vm8 = vcmp.ge.s32.totalorder %v576_v51, %v1975_v21  ;;  %v592_v55 = vadd.s32 %v591_v52, %v589_v53 }
 0x241   : > { %v595_v56 = vsel %vm577_vm8, %v544_v12, %v594_v54 }
 0x242   : > { %vm593_vm9 = vcmp.ge.s32.totalorder %v592_v55, %v1975_v21 }
 0x243   : > { %v596_v57 = vsel %vm593_vm9, %v545_v14, %v595_v56 }
 0x244   : > { %v598_v59 = vor.u32 16777216, %v596_v57  ;;  %v597_v60 = vor.u32 8388608, %v596_v57  ;;  %v599_v61 = vor.u32 25165824, %v596_v57 }
 0x246   : > { %vm616_vm10 = vcmp.ge.s32.totalorder %v1959_v38, %v598_v59  ;;  %vm600_vm11 = vcmp.ge.s32.totalorder %v1959_v38, %v597_v60  ;;  %vm632_vm12 = vcmp.ge.s32.totalorder %v1959_v38, %v599_v61 }
 0x247   : > { %v617_v62 = vsel %vm616_vm10, 1, %v1733_v39  ;;  %v601_v63 = vsel %vm600_vm11, 1, %v1733_v39  ;;  %v633_v8 = vsel %vm632_vm12, 1, %v1733_v39 }
 0x248   : > { %v618_v1 = vsel %vm389_vm1, %v617_v62, 0  ;;  %v602_v4 = vsel %vm389_vm1, %v601_v63, 0  ;;  %v634_v13 = vsel %vm389_vm1, %v633_v8, 0 }
 0x249   : > { %v620_v5 = vshrl.u32 %v618_v1, 16  ;;  %v604_v6 = vshrl.u32 %v602_v4, 16  ;;  %v603_v7 = vand.u32 65535, %v602_v4  ;;  %v619_v14 = vand.u32 65535, %v618_v1 }
 0x24a   : > { %v636_v15 = vshrl.u32 %v634_v13, 16  ;;  %v635_v16 = vand.u32 65535, %v634_v13 }
 0x24b   : > { %v622_v10 = vcvt.s32.f32 %v620_v5  ;;  %v606_v11 = vcvt.s32.f32 %v604_v6  ;;  %v605_v12 = vcvt.s32.f32 %v603_v7  ;;  %v621_v17 = vcvt.s32.f32 %v619_v14 }
 0x24c   : > { %v638_v18 = vcvt.s32.f32 %v636_v15  ;;  %v637_v19 = vcvt.s32.f32 %v635_v16 }
 0x24d   : > { %625 = vadd.xlane.f32.xlu2 %v622_v10  ;;  %609 = vadd.xlane.f32.xlu1 %v606_v11 }
 0x24e   : > { %607 = vadd.xlane.f32.xlu0 %v605_v12 }
 0x255   : > { %623 = vadd.xlane.f32.xlu2 %v621_v17  ;;  %641 = vadd.xlane.f32.xlu1 %v638_v18 }
 0x256   : > { %639 = vadd.xlane.f32.xlu0 %v637_v19 }
 0x2c0   : > { %v626_v20 = vpop.xlane.xlu2 %625  ;;  %v610_v22 = vpop.xlane.xlu1 %609 }
 0x2c1   : > { %v612_v23 = vcvt.f32.s32 %v610_v22  ;;  %v608_v24 = vpop.xlane.xlu0 %607  ;;  %v628_v27 = vcvt.f32.s32 %v626_v20 }
 0x2c2   : > { %v611_v26 = vcvt.f32.s32 %v608_v24 }
 0x2c3   : > { %v613_v25 = vshll.u32 %v612_v23, 16  ;;  %v629_v31 = vshll.u32 %v628_v27, 16 }
 0x2c5   : > { %v614_v28 = vadd.s32 %v613_v25, %v611_v26 }
 0x2c7   : > { %vm615_vm13 = vcmp.ge.s32.totalorder %v614_v28, %v1975_v21 }
 0x2c8   : > { %v624_v29 = vpop.xlane.xlu2 %623  ;;  %v642_v30 = vpop.xlane.xlu1 %641  ;;  %v648_v41 = vsel %vm615_vm13, %v597_v60, %v596_v57 }
 0x2c9   : > { %v627_v32 = vcvt.f32.s32 %v624_v29  ;;  %v644_v33 = vcvt.f32.s32 %v642_v30  ;;  %v640_v34 = vpop.xlane.xlu0 %639 }
 0x2ca   : > { %v643_v40 = vcvt.f32.s32 %v640_v34 }
 0x2cb   : > { %v630_v35 = vadd.s32 %v629_v31, %v627_v32  ;;  %v645_v37 = vshll.u32 %v644_v33, 16 }
 0x2cd   : > { %vm631_vm14 = vcmp.ge.s32.totalorder %v630_v35, %v1975_v21  ;;  %v646_v42 = vadd.s32 %v645_v37, %v643_v40 }
 0x2ce   : > { %v649_v43 = vsel %vm631_vm14, %v598_v59, %v648_v41 }
 0x2cf   : > { %vm647_vm15 = vcmp.ge.s32.totalorder %v646_v42, %v1975_v21 }
 0x2d0   : > { %v650_v44 = vsel %vm647_vm15, %v599_v61, %v649_v43 }
 0x2d1   : > { %v652_v45 = vor.u32 4194304, %v650_v44  ;;  %v651_v46 = vor.u32 2097152, %v650_v44  ;;  %v653_v47 = vor.u32 6291456, %v650_v44 }
 0x2d3   : > { %vm670_vm0 = vcmp.ge.s32.totalorder %v1959_v38, %v652_v45  ;;  %vm654_vm3 = vcmp.ge.s32.totalorder %v1959_v38, %v651_v46  ;;  %vm686_vm4 = vcmp.ge.s32.totalorder %v1959_v38, %v653_v47 }
 0x2d4   : > { %v671_v48 = vsel %vm670_vm0, 1, %v1733_v39  ;;  %v655_v49 = vsel %vm654_vm3, 1, %v1733_v39  ;;  %v687_v55 = vsel %vm686_vm4, 1, %v1733_v39 }
 0x2d5   : > { %v672_v50 = vsel %vm389_vm1, %v671_v48, 0  ;;  %v656_v51 = vsel %vm389_vm1, %v655_v49, 0  ;;  %v688_v60 = vsel %vm389_vm1, %v687_v55, 0 }
 0x2d6   : > { %v674_v52 = vshrl.u32 %v672_v50, 16  ;;  %v658_v53 = vshrl.u32 %v656_v51, 16  ;;  %v657_v54 = vand.u32 65535, %v656_v51  ;;  %v673_v61 = vand.u32 65535, %v672_v50 }
 0x2d7   : > { %v690_v62 = vshrl.u32 %v688_v60, 16  ;;  %v689_v63 = vand.u32 65535, %v688_v60 }
 0x2d8   : > { %v676_v56 = vcvt.s32.f32 %v674_v52  ;;  %v660_v57 = vcvt.s32.f32 %v658_v53  ;;  %v659_v59 = vcvt.s32.f32 %v657_v54  ;;  %v675_v1 = vcvt.s32.f32 %v673_v61 }
 0x2d9   : > { %v692_v4 = vcvt.s32.f32 %v690_v62  ;;  %v691_v5 = vcvt.s32.f32 %v689_v63 }
 0x2da   : > { %679 = vadd.xlane.f32.xlu2 %v676_v56  ;;  %663 = vadd.xlane.f32.xlu1 %v660_v57 }
 0x2db   : > { %661 = vadd.xlane.f32.xlu0 %v659_v59 }
 0x2e2   : > { %677 = vadd.xlane.f32.xlu2 %v675_v1  ;;  %695 = vadd.xlane.f32.xlu1 %v692_v4 }
 0x2e3   : > { %693 = vadd.xlane.f32.xlu0 %v691_v5 }
 0x34d   : > { %v680_v6 = vpop.xlane.xlu2 %679  ;;  %v664_v7 = vpop.xlane.xlu1 %663 }
 0x34e   : > { %v666_v8 = vcvt.f32.s32 %v664_v7  ;;  %v662_v10 = vpop.xlane.xlu0 %661  ;;  %v682_v13 = vcvt.f32.s32 %v680_v6 }
 0x34f   : > { %v665_v12 = vcvt.f32.s32 %v662_v10 }
 0x350   : > { %v667_v11 = vshll.u32 %v666_v8, 16  ;;  %v683_v17 = vshll.u32 %v682_v13, 16 }
 0x352   : > { %v668_v14 = vadd.s32 %v667_v11, %v665_v12 }
 0x354   : > { %vm669_vm5 = vcmp.ge.s32.totalorder %v668_v14, %v1975_v21 }
 0x355   : > { %v678_v15 = vpop.xlane.xlu2 %677  ;;  %v696_v16 = vpop.xlane.xlu1 %695  ;;  %v702_v25 = vsel %vm669_vm5, %v651_v46, %v650_v44 }
 0x356   : > { %v681_v18 = vcvt.f32.s32 %v678_v15  ;;  %v698_v19 = vcvt.f32.s32 %v696_v16  ;;  %v694_v20 = vpop.xlane.xlu0 %693 }
 0x357   : > { %v697_v24 = vcvt.f32.s32 %v694_v20 }
 0x358   : > { %v684_v22 = vadd.s32 %v683_v17, %v681_v18  ;;  %v699_v23 = vshll.u32 %v698_v19, 16 }
 0x35a   : > { %vm685_vm6 = vcmp.ge.s32.totalorder %v684_v22, %v1975_v21  ;;  %v700_v26 = vadd.s32 %v699_v23, %v697_v24 }
 0x35b   : > { %v703_v27 = vsel %vm685_vm6, %v652_v45, %v702_v25 }
 0x35c   : > { %vm701_vm7 = vcmp.ge.s32.totalorder %v700_v26, %v1975_v21 }
 0x35d   : > { %v704_v28 = vsel %vm701_vm7, %v653_v47, %v703_v27 }
 0x35e   : > { %v706_v29 = vor.u32 1048576, %v704_v28  ;;  %v705_v30 = vor.u32 524288, %v704_v28  ;;  %v707_v31 = vor.u32 1572864, %v704_v28 }
 0x360   : > { %vm724_vm8 = vcmp.ge.s32.totalorder %v1959_v38, %v706_v29  ;;  %vm708_vm9 = vcmp.ge.s32.totalorder %v1959_v38, %v705_v30  ;;  %vm740_vm10 = vcmp.ge.s32.totalorder %v1959_v38, %v707_v31 }
 0x361   : > { %v725_v32 = vsel %vm724_vm8, 1, %v1733_v39  ;;  %v709_v33 = vsel %vm708_vm9, 1, %v1733_v39  ;;  %v741_v42 = vsel %vm740_vm10, 1, %v1733_v39 }
 0x362   : > { %v726_v34 = vsel %vm389_vm1, %v725_v32, 0  ;;  %v710_v35 = vsel %vm389_vm1, %v709_v33, 0  ;;  %v742_v46 = vsel %vm389_vm1, %v741_v42, 0 }
 0x363   : > { %v728_v37 = vshrl.u32 %v726_v34, 16  ;;  %v712_v40 = vshrl.u32 %v710_v35, 16  ;;  %v711_v41 = vand.u32 65535, %v710_v35  ;;  %v727_v47 = vand.u32 65535, %v726_v34 }
 0x364   : > { %v744_v48 = vshrl.u32 %v742_v46, 16  ;;  %v743_v49 = vand.u32 65535, %v742_v46 }
 0x365   : > { %v730_v43 = vcvt.s32.f32 %v728_v37  ;;  %v714_v44 = vcvt.s32.f32 %v712_v40  ;;  %v713_v45 = vcvt.s32.f32 %v711_v41  ;;  %v729_v50 = vcvt.s32.f32 %v727_v47 }
 0x366   : > { %v746_v51 = vcvt.s32.f32 %v744_v48  ;;  %v745_v52 = vcvt.s32.f32 %v743_v49 }
 0x367   : > { %733 = vadd.xlane.f32.xlu2 %v730_v43  ;;  %717 = vadd.xlane.f32.xlu1 %v714_v44 }
 0x368   : > { %715 = vadd.xlane.f32.xlu0 %v713_v45 }
 0x36f   : > { %731 = vadd.xlane.f32.xlu2 %v729_v50  ;;  %749 = vadd.xlane.f32.xlu1 %v746_v51 }
 0x370   : > { %747 = vadd.xlane.f32.xlu0 %v745_v52 }
 0x3da   : > { %v734_v53 = vpop.xlane.xlu2 %733  ;;  %v718_v54 = vpop.xlane.xlu1 %717 }
 0x3db   : > { %v720_v55 = vcvt.f32.s32 %v718_v54  ;;  %v716_v56 = vpop.xlane.xlu0 %715  ;;  %v736_v60 = vcvt.f32.s32 %v734_v53 }
 0x3dc   : > { %v719_v59 = vcvt.f32.s32 %v716_v56 }
 0x3dd   : > { %v721_v57 = vshll.u32 %v720_v55, 16  ;;  %v737_v1 = vshll.u32 %v736_v60, 16 }
 0x3df   : > { %v722_v61 = vadd.s32 %v721_v57, %v719_v59 }
 0x3e1   : > { %vm723_vm11 = vcmp.ge.s32.totalorder %v722_v61, %v1975_v21 }
 0x3e2   : > { %v732_v62 = vpop.xlane.xlu2 %731  ;;  %v750_v63 = vpop.xlane.xlu1 %749  ;;  %v756_v11 = vsel %vm723_vm11, %v705_v30, %v704_v28 }
 0x3e3   : > { %v735_v4 = vcvt.f32.s32 %v732_v62  ;;  %v752_v5 = vcvt.f32.s32 %v750_v63  ;;  %v748_v6 = vpop.xlane.xlu0 %747 }
 0x3e4   : > { %v751_v10 = vcvt.f32.s32 %v748_v6 }
 0x3e5   : > { %v738_v7 = vadd.s32 %v737_v1, %v735_v4  ;;  %v753_v8 = vshll.u32 %v752_v5, 16 }
 0x3e7   : > { %vm739_vm12 = vcmp.ge.s32.totalorder %v738_v7, %v1975_v21  ;;  %v754_v12 = vadd.s32 %v753_v8, %v751_v10 }
 0x3e8   : > { %v757_v13 = vsel %vm739_vm12, %v706_v29, %v756_v11 }
 0x3e9   : > { %vm755_vm13 = vcmp.ge.s32.totalorder %v754_v12, %v1975_v21 }
 0x3ea   : > { %v758_v14 = vsel %vm755_vm13, %v707_v31, %v757_v13 }
 0x3eb   : > { %v760_v15 = vor.u32 262144, %v758_v14  ;;  %v759_v16 = vor.u32 131072, %v758_v14  ;;  %v761_v17 = vor.u32 393216, %v758_v14 }
 0x3ed   : > { %vm778_vm14 = vcmp.ge.s32.totalorder %v1959_v38, %v760_v15  ;;  %vm762_vm15 = vcmp.ge.s32.totalorder %v1959_v38, %v759_v16  ;;  %vm794_vm0 = vcmp.ge.s32.totalorder %v1959_v38, %v761_v17 }
 0x3ee   : > { %v779_v18 = vsel %vm778_vm14, 1, %v1733_v39  ;;  %v763_v19 = vsel %vm762_vm15, 1, %v1733_v39  ;;  %v795_v26 = vsel %vm794_vm0, 1, %v1733_v39 }
 0x3ef   : > { %v780_v20 = vsel %vm389_vm1, %v779_v18, 0  ;;  %v764_v22 = vsel %vm389_vm1, %v763_v19, 0  ;;  %v796_v30 = vsel %vm389_vm1, %v795_v26, 0 }
 0x3f0   : > { %v782_v23 = vshrl.u32 %v780_v20, 16  ;;  %v766_v24 = vshrl.u32 %v764_v22, 16  ;;  %v765_v25 = vand.u32 65535, %v764_v22  ;;  %v781_v31 = vand.u32 65535, %v780_v20 }
 0x3f1   : > { %v798_v32 = vshrl.u32 %v796_v30, 16  ;;  %v797_v33 = vand.u32 65535, %v796_v30 }
 0x3f2   : > { %v784_v27 = vcvt.s32.f32 %v782_v23  ;;  %v768_v28 = vcvt.s32.f32 %v766_v24  ;;  %v767_v29 = vcvt.s32.f32 %v765_v25  ;;  %v783_v34 = vcvt.s32.f32 %v781_v31 }
 0x3f3   : > { %v800_v35 = vcvt.s32.f32 %v798_v32  ;;  %v799_v37 = vcvt.s32.f32 %v797_v33 }
 0x3f4   : > { %787 = vadd.xlane.f32.xlu2 %v784_v27  ;;  %771 = vadd.xlane.f32.xlu1 %v768_v28 }
 0x3f5   : > { %769 = vadd.xlane.f32.xlu0 %v767_v29 }
 0x3fc   : > { %785 = vadd.xlane.f32.xlu2 %v783_v34  ;;  %803 = vadd.xlane.f32.xlu1 %v800_v35 }
 0x3fd   : > { %801 = vadd.xlane.f32.xlu0 %v799_v37 }
 0x467   : > { %v788_v40 = vpop.xlane.xlu2 %787  ;;  %v772_v41 = vpop.xlane.xlu1 %771 }
 0x468   : > { %v774_v42 = vcvt.f32.s32 %v772_v41  ;;  %v770_v43 = vpop.xlane.xlu0 %769  ;;  %v790_v46 = vcvt.f32.s32 %v788_v40 }
 0x469   : > { %v773_v45 = vcvt.f32.s32 %v770_v43 }
 0x46a   : > { %v775_v44 = vshll.u32 %v774_v42, 16  ;;  %v791_v50 = vshll.u32 %v790_v46, 16 }
 0x46c   : > { %v776_v47 = vadd.s32 %v775_v44, %v773_v45 }
 0x46e   : > { %vm777_vm3 = vcmp.ge.s32.totalorder %v776_v47, %v1975_v21 }
 0x46f   : > { %v786_v48 = vpop.xlane.xlu2 %785  ;;  %v804_v49 = vpop.xlane.xlu1 %803  ;;  %v810_v57 = vsel %vm777_vm3, %v759_v16, %v758_v14 }
 0x470   : > { %v789_v51 = vcvt.f32.s32 %v786_v48  ;;  %v806_v52 = vcvt.f32.s32 %v804_v49  ;;  %v802_v53 = vpop.xlane.xlu0 %801 }
 0x471   : > { %v805_v56 = vcvt.f32.s32 %v802_v53 }
 0x472   : > { %v792_v54 = vadd.s32 %v791_v50, %v789_v51  ;;  %v807_v55 = vshll.u32 %v806_v52, 16 }
 0x474   : > { %vm793_vm4 = vcmp.ge.s32.totalorder %v792_v54, %v1975_v21  ;;  %v808_v59 = vadd.s32 %v807_v55, %v805_v56 }
 0x475   : > { %v811_v60 = vsel %vm793_vm4, %v760_v15, %v810_v57 }
 0x476   : > { %vm809_vm5 = vcmp.ge.s32.totalorder %v808_v59, %v1975_v21 }
 0x477   : > { %v812_v61 = vsel %vm809_vm5, %v761_v17, %v811_v60 }
 0x478   : > { %v814_v62 = vor.u32 65536, %v812_v61  ;;  %v813_v63 = vor.u32 32768, %v812_v61  ;;  %v815_v1 = vor.u32 98304, %v812_v61 }
 0x47a   : > { %vm832_vm6 = vcmp.ge.s32.totalorder %v1959_v38, %v814_v62  ;;  %vm816_vm7 = vcmp.ge.s32.totalorder %v1959_v38, %v813_v63  ;;  %vm848_vm8 = vcmp.ge.s32.totalorder %v1959_v38, %v815_v1 }
 0x47b   : > { %v833_v4 = vsel %vm832_vm6, 1, %v1733_v39  ;;  %v817_v5 = vsel %vm816_vm7, 1, %v1733_v39  ;;  %v849_v12 = vsel %vm848_vm8, 1, %v1733_v39 }
 0x47c   : > { %v834_v6 = vsel %vm389_vm1, %v833_v4, 0  ;;  %v818_v7 = vsel %vm389_vm1, %v817_v5, 0  ;;  %v850_v16 = vsel %vm389_vm1, %v849_v12, 0 }
 0x47d   : > { %v836_v8 = vshrl.u32 %v834_v6, 16  ;;  %v820_v10 = vshrl.u32 %v818_v7, 16  ;;  %v819_v11 = vand.u32 65535, %v818_v7  ;;  %v835_v17 = vand.u32 65535, %v834_v6 }
 0x47e   : > { %v852_v18 = vshrl.u32 %v850_v16, 16  ;;  %v851_v19 = vand.u32 65535, %v850_v16 }
 0x47f   : > { %v838_v13 = vcvt.s32.f32 %v836_v8  ;;  %v822_v14 = vcvt.s32.f32 %v820_v10  ;;  %v821_v15 = vcvt.s32.f32 %v819_v11  ;;  %v837_v20 = vcvt.s32.f32 %v835_v17 }
 0x480   : > { %v854_v22 = vcvt.s32.f32 %v852_v18  ;;  %v853_v23 = vcvt.s32.f32 %v851_v19 }
 0x481   : > { %841 = vadd.xlane.f32.xlu2 %v838_v13  ;;  %825 = vadd.xlane.f32.xlu1 %v822_v14 }
 0x482   : > { %823 = vadd.xlane.f32.xlu0 %v821_v15 }
 0x489   : > { %839 = vadd.xlane.f32.xlu2 %v837_v20  ;;  %857 = vadd.xlane.f32.xlu1 %v854_v22 }
 0x48a   : > { %855 = vadd.xlane.f32.xlu0 %v853_v23 }
 0x4f4   : > { %v842_v24 = vpop.xlane.xlu2 %841  ;;  %v826_v25 = vpop.xlane.xlu1 %825 }
 0x4f5   : > { %v828_v26 = vcvt.f32.s32 %v826_v25  ;;  %v824_v27 = vpop.xlane.xlu0 %823  ;;  %v844_v30 = vcvt.f32.s32 %v842_v24 }
 0x4f6   : > { %v827_v29 = vcvt.f32.s32 %v824_v27 }
 0x4f7   : > { %v829_v28 = vshll.u32 %v828_v26, 16  ;;  %v845_v34 = vshll.u32 %v844_v30, 16 }
 0x4f9   : > { %v830_v31 = vadd.s32 %v829_v28, %v827_v29 }
 0x4fb   : > { %vm831_vm9 = vcmp.ge.s32.totalorder %v830_v31, %v1975_v21 }
 0x4fc   : > { %v840_v32 = vpop.xlane.xlu2 %839  ;;  %v858_v33 = vpop.xlane.xlu1 %857  ;;  %v864_v44 = vsel %vm831_vm9, %v813_v63, %v812_v61 }
 0x4fd   : > { %v843_v35 = vcvt.f32.s32 %v840_v32  ;;  %v860_v37 = vcvt.f32.s32 %v858_v33  ;;  %v856_v40 = vpop.xlane.xlu0 %855 }
 0x4fe   : > { %v859_v43 = vcvt.f32.s32 %v856_v40 }
 0x4ff   : > { %v846_v41 = vadd.s32 %v845_v34, %v843_v35  ;;  %v861_v42 = vshll.u32 %v860_v37, 16 }
 0x501   : > { %vm847_vm10 = vcmp.ge.s32.totalorder %v846_v41, %v1975_v21  ;;  %v862_v45 = vadd.s32 %v861_v42, %v859_v43 }
 0x502   : > { %v865_v46 = vsel %vm847_vm10, %v814_v62, %v864_v44 }
 0x503   : > { %vm863_vm11 = vcmp.ge.s32.totalorder %v862_v45, %v1975_v21 }
 0x504   : > { %v866_v47 = vsel %vm863_vm11, %v815_v1, %v865_v46 }
 0x505   : > { %v868_v48 = vor.u32 16384, %v866_v47  ;;  %v867_v49 = vor.u32 8192, %v866_v47  ;;  %v869_v50 = vor.u32 24576, %v866_v47 }
 0x507   : > { %vm886_vm12 = vcmp.ge.s32.totalorder %v1959_v38, %v868_v48  ;;  %vm870_vm13 = vcmp.ge.s32.totalorder %v1959_v38, %v867_v49  ;;  %vm902_vm14 = vcmp.ge.s32.totalorder %v1959_v38, %v869_v50 }
 0x508   : > { %v887_v51 = vsel %vm886_vm12, 1, %v1733_v39  ;;  %v871_v52 = vsel %vm870_vm13, 1, %v1733_v39  ;;  %v903_v59 = vsel %vm902_vm14, 1, %v1733_v39 }
 0x509   : > { %v888_v53 = vsel %vm389_vm1, %v887_v51, 0  ;;  %v872_v54 = vsel %vm389_vm1, %v871_v52, 0  ;;  %v904_v63 = vsel %vm389_vm1, %v903_v59, 0 }
 0x50a   : > { %v890_v55 = vshrl.u32 %v888_v53, 16  ;;  %v874_v56 = vshrl.u32 %v872_v54, 16  ;;  %v873_v57 = vand.u32 65535, %v872_v54  ;;  %v889_v1 = vand.u32 65535, %v888_v53 }
 0x50b   : > { %v906_v4 = vshrl.u32 %v904_v63, 16  ;;  %v905_v5 = vand.u32 65535, %v904_v63 }
 0x50c   : > { %v892_v60 = vcvt.s32.f32 %v890_v55  ;;  %v876_v61 = vcvt.s32.f32 %v874_v56  ;;  %v875_v62 = vcvt.s32.f32 %v873_v57  ;;  %v891_v6 = vcvt.s32.f32 %v889_v1 }
 0x50d   : > { %v908_v7 = vcvt.s32.f32 %v906_v4  ;;  %v907_v8 = vcvt.s32.f32 %v905_v5 }
 0x50e   : > { %895 = vadd.xlane.f32.xlu2 %v892_v60  ;;  %879 = vadd.xlane.f32.xlu1 %v876_v61 }
 0x50f   : > { %877 = vadd.xlane.f32.xlu0 %v875_v62 }
 0x516   : > { %893 = vadd.xlane.f32.xlu2 %v891_v6  ;;  %911 = vadd.xlane.f32.xlu1 %v908_v7 }
 0x517   : > { %909 = vadd.xlane.f32.xlu0 %v907_v8 }
 0x581   : > { %v896_v10 = vpop.xlane.xlu2 %895  ;;  %v880_v11 = vpop.xlane.xlu1 %879 }
 0x582   : > { %v882_v12 = vcvt.f32.s32 %v880_v11  ;;  %v878_v13 = vpop.xlane.xlu0 %877  ;;  %v898_v16 = vcvt.f32.s32 %v896_v10 }
 0x583   : > { %v881_v15 = vcvt.f32.s32 %v878_v13 }
 0x584   : > { %v883_v14 = vshll.u32 %v882_v12, 16  ;;  %v899_v20 = vshll.u32 %v898_v16, 16 }
 0x586   : > { %v884_v17 = vadd.s32 %v883_v14, %v881_v15 }
 0x588   : > { %vm885_vm15 = vcmp.ge.s32.totalorder %v884_v17, %v1975_v21 }
 0x589   : > { %v894_v18 = vpop.xlane.xlu2 %893  ;;  %v912_v19 = vpop.xlane.xlu1 %911  ;;  %v918_v28 = vsel %vm885_vm15, %v867_v49, %v866_v47 }
 0x58a   : > { %v897_v22 = vcvt.f32.s32 %v894_v18  ;;  %v914_v23 = vcvt.f32.s32 %v912_v19  ;;  %v910_v24 = vpop.xlane.xlu0 %909 }
 0x58b   : > { %v913_v27 = vcvt.f32.s32 %v910_v24 }
 0x58c   : > { %v900_v25 = vadd.s32 %v899_v20, %v897_v22  ;;  %v915_v26 = vshll.u32 %v914_v23, 16 }
 0x58e   : > { %vm901_vm0 = vcmp.ge.s32.totalorder %v900_v25, %v1975_v21  ;;  %v916_v29 = vadd.s32 %v915_v26, %v913_v27 }
 0x58f   : > { %v919_v30 = vsel %vm901_vm0, %v868_v48, %v918_v28 }
 0x590   : > { %vm917_vm3 = vcmp.ge.s32.totalorder %v916_v29, %v1975_v21 }
 0x591   : > { %v920_v31 = vsel %vm917_vm3, %v869_v50, %v919_v30 }
 0x592   : > { %v922_v32 = vor.u32 4096, %v920_v31  ;;  %v921_v33 = vor.u32 2048, %v920_v31  ;;  %v923_v34 = vor.u32 6144, %v920_v31 }
 0x594   : > { %vm940_vm4 = vcmp.ge.s32.totalorder %v1959_v38, %v922_v32  ;;  %vm924_vm5 = vcmp.ge.s32.totalorder %v1959_v38, %v921_v33  ;;  %vm956_vm6 = vcmp.ge.s32.totalorder %v1959_v38, %v923_v34 }
 0x595   : > { %v941_v35 = vsel %vm940_vm4, 1, %v1733_v39  ;;  %v925_v37 = vsel %vm924_vm5, 1, %v1733_v39  ;;  %v957_v45 = vsel %vm956_vm6, 1, %v1733_v39 }
 0x596   : > { %v942_v40 = vsel %vm389_vm1, %v941_v35, 0  ;;  %v926_v41 = vsel %vm389_vm1, %v925_v37, 0  ;;  %v958_v49 = vsel %vm389_vm1, %v957_v45, 0 }
 0x597   : > { %v944_v42 = vshrl.u32 %v942_v40, 16  ;;  %v928_v43 = vshrl.u32 %v926_v41, 16  ;;  %v927_v44 = vand.u32 65535, %v926_v41  ;;  %v943_v50 = vand.u32 65535, %v942_v40 }
 0x598   : > { %v960_v51 = vshrl.u32 %v958_v49, 16  ;;  %v959_v52 = vand.u32 65535, %v958_v49 }
 0x599   : > { %v946_v46 = vcvt.s32.f32 %v944_v42  ;;  %v930_v47 = vcvt.s32.f32 %v928_v43  ;;  %v929_v48 = vcvt.s32.f32 %v927_v44  ;;  %v945_v53 = vcvt.s32.f32 %v943_v50 }
 0x59a   : > { %v962_v54 = vcvt.s32.f32 %v960_v51  ;;  %v961_v55 = vcvt.s32.f32 %v959_v52 }
 0x59b   : > { %949 = vadd.xlane.f32.xlu2 %v946_v46  ;;  %933 = vadd.xlane.f32.xlu1 %v930_v47 }
 0x59c   : > { %931 = vadd.xlane.f32.xlu0 %v929_v48 }
 0x5a3   : > { %947 = vadd.xlane.f32.xlu2 %v945_v53  ;;  %965 = vadd.xlane.f32.xlu1 %v962_v54 }
 0x5a4   : > { %963 = vadd.xlane.f32.xlu0 %v961_v55 }
 0x60e   : > { %v950_v56 = vpop.xlane.xlu2 %949  ;;  %v934_v57 = vpop.xlane.xlu1 %933 }
 0x60f   : > { %v936_v59 = vcvt.f32.s32 %v934_v57  ;;  %v932_v60 = vpop.xlane.xlu0 %931  ;;  %v952_v63 = vcvt.f32.s32 %v950_v56 }
 0x610   : > { %v935_v62 = vcvt.f32.s32 %v932_v60 }
 0x611   : > { %v937_v61 = vshll.u32 %v936_v59, 16  ;;  %v953_v6 = vshll.u32 %v952_v63, 16 }
 0x613   : > { %v938_v1 = vadd.s32 %v937_v61, %v935_v62 }
 0x615   : > { %vm939_vm7 = vcmp.ge.s32.totalorder %v938_v1, %v1975_v21 }
 0x616   : > { %v948_v4 = vpop.xlane.xlu2 %947  ;;  %v966_v5 = vpop.xlane.xlu1 %965  ;;  %v972_v14 = vsel %vm939_vm7, %v921_v33, %v920_v31 }
 0x617   : > { %v951_v7 = vcvt.f32.s32 %v948_v4  ;;  %v968_v8 = vcvt.f32.s32 %v966_v5  ;;  %v964_v10 = vpop.xlane.xlu0 %963 }
 0x618   : > { %v967_v13 = vcvt.f32.s32 %v964_v10 }
 0x619   : > { %v954_v11 = vadd.s32 %v953_v6, %v951_v7  ;;  %v969_v12 = vshll.u32 %v968_v8, 16 }
 0x61b   : > { %vm955_vm8 = vcmp.ge.s32.totalorder %v954_v11, %v1975_v21  ;;  %v970_v15 = vadd.s32 %v969_v12, %v967_v13 }
 0x61c   : > { %v973_v16 = vsel %vm955_vm8, %v922_v32, %v972_v14 }
 0x61d   : > { %vm971_vm9 = vcmp.ge.s32.totalorder %v970_v15, %v1975_v21 }
 0x61e   : > { %v974_v17 = vsel %vm971_vm9, %v923_v34, %v973_v16 }
 0x61f   : > { %v976_v18 = vor.u32 1024, %v974_v17  ;;  %v975_v19 = vor.u32 512, %v974_v17  ;;  %v977_v20 = vor.u32 1536, %v974_v17 }
 0x621   : > { %vm994_vm10 = vcmp.ge.s32.totalorder %v1959_v38, %v976_v18  ;;  %vm978_vm11 = vcmp.ge.s32.totalorder %v1959_v38, %v975_v19  ;;  %vm1010_vm12 = vcmp.ge.s32.totalorder %v1959_v38, %v977_v20 }
 0x622   : > { %v995_v22 = vsel %vm994_vm10, 1, %v1733_v39  ;;  %v979_v23 = vsel %vm978_vm11, 1, %v1733_v39  ;;  %v1011_v29 = vsel %vm1010_vm12, 1, %v1733_v39 }
 0x623   : > { %v996_v24 = vsel %vm389_vm1, %v995_v22, 0  ;;  %v980_v25 = vsel %vm389_vm1, %v979_v23, 0  ;;  %v1012_v33 = vsel %vm389_vm1, %v1011_v29, 0 }
 0x624   : > { %v998_v26 = vshrl.u32 %v996_v24, 16  ;;  %v982_v27 = vshrl.u32 %v980_v25, 16  ;;  %v981_v28 = vand.u32 65535, %v980_v25  ;;  %v997_v34 = vand.u32 65535, %v996_v24 }
 0x625   : > { %v1014_v35 = vshrl.u32 %v1012_v33, 16  ;;  %v1013_v37 = vand.u32 65535, %v1012_v33 }
 0x626   : > { %v1000_v30 = vcvt.s32.f32 %v998_v26  ;;  %v984_v31 = vcvt.s32.f32 %v982_v27  ;;  %v983_v32 = vcvt.s32.f32 %v981_v28  ;;  %v999_v40 = vcvt.s32.f32 %v997_v34 }
 0x627   : > { %v1016_v41 = vcvt.s32.f32 %v1014_v35  ;;  %v1015_v42 = vcvt.s32.f32 %v1013_v37 }
 0x628   : > { %1003 = vadd.xlane.f32.xlu2 %v1000_v30  ;;  %987 = vadd.xlane.f32.xlu1 %v984_v31 }
 0x629   : > { %985 = vadd.xlane.f32.xlu0 %v983_v32 }
 0x630   : > { %1001 = vadd.xlane.f32.xlu2 %v999_v40  ;;  %1019 = vadd.xlane.f32.xlu1 %v1016_v41 }
 0x631   : > { %1017 = vadd.xlane.f32.xlu0 %v1015_v42 }
 0x69b   : > { %v1004_v43 = vpop.xlane.xlu2 %1003  ;;  %v988_v44 = vpop.xlane.xlu1 %987 }
 0x69c   : > { %v990_v45 = vcvt.f32.s32 %v988_v44  ;;  %v986_v46 = vpop.xlane.xlu0 %985  ;;  %v1006_v49 = vcvt.f32.s32 %v1004_v43 }
 0x69d   : > { %v989_v48 = vcvt.f32.s32 %v986_v46 }
 0x69e   : > { %v991_v47 = vshll.u32 %v990_v45, 16  ;;  %v1007_v53 = vshll.u32 %v1006_v49, 16 }
 0x6a0   : > { %v992_v50 = vadd.s32 %v991_v47, %v989_v48 }
 0x6a2   : > { %vm993_vm13 = vcmp.ge.s32.totalorder %v992_v50, %v1975_v21 }
 0x6a3   : > { %v1002_v51 = vpop.xlane.xlu2 %1001  ;;  %v1020_v52 = vpop.xlane.xlu1 %1019  ;;  %v1026_v61 = vsel %vm993_vm13, %v975_v19, %v974_v17 }
 0x6a4   : > { %v1005_v54 = vcvt.f32.s32 %v1002_v51  ;;  %v1022_v55 = vcvt.f32.s32 %v1020_v52  ;;  %v1018_v56 = vpop.xlane.xlu0 %1017 }
 0x6a5   : > { %v1021_v60 = vcvt.f32.s32 %v1018_v56 }
 0x6a6   : > { %v1008_v57 = vadd.s32 %v1007_v53, %v1005_v54  ;;  %v1023_v59 = vshll.u32 %v1022_v55, 16 }
 0x6a8   : > { %vm1009_vm14 = vcmp.ge.s32.totalorder %v1008_v57, %v1975_v21  ;;  %v1024_v62 = vadd.s32 %v1023_v59, %v1021_v60 }
 0x6a9   : > { %v1027_v63 = vsel %vm1009_vm14, %v976_v18, %v1026_v61 }
 0x6aa   : > { %vm1025_vm15 = vcmp.ge.s32.totalorder %v1024_v62, %v1975_v21 }
 0x6ab   : > { %v1028_v1 = vsel %vm1025_vm15, %v977_v20, %v1027_v63 }
 0x6ac   : > { %v1030_v4 = vor.u32 256, %v1028_v1  ;;  %v1029_v5 = vor.u32 128, %v1028_v1  ;;  %v1031_v6 = vor.u32 384, %v1028_v1 }
 0x6ae   : > { %vm1048_vm0 = vcmp.ge.s32.totalorder %v1959_v38, %v1030_v4  ;;  %vm1032_vm3 = vcmp.ge.s32.totalorder %v1959_v38, %v1029_v5  ;;  %vm1064_vm4 = vcmp.ge.s32.totalorder %v1959_v38, %v1031_v6 }
 0x6af   : > { %v1049_v7 = vsel %vm1048_vm0, 1, %v1733_v39  ;;  %v1033_v8 = vsel %vm1032_vm3, 1, %v1733_v39  ;;  %v1065_v15 = vsel %vm1064_vm4, 1, %v1733_v39 }
 0x6b0   : > { %v1050_v10 = vsel %vm389_vm1, %v1049_v7, 0  ;;  %v1034_v11 = vsel %vm389_vm1, %v1033_v8, 0  ;;  %v1066_v19 = vsel %vm389_vm1, %v1065_v15, 0 }
 0x6b1   : > { %v1052_v12 = vshrl.u32 %v1050_v10, 16  ;;  %v1036_v13 = vshrl.u32 %v1034_v11, 16  ;;  %v1035_v14 = vand.u32 65535, %v1034_v11  ;;  %v1051_v20 = vand.u32 65535, %v1050_v10 }
 0x6b2   : > { %v1068_v22 = vshrl.u32 %v1066_v19, 16  ;;  %v1067_v23 = vand.u32 65535, %v1066_v19 }
 0x6b3   : > { %v1054_v16 = vcvt.s32.f32 %v1052_v12  ;;  %v1038_v17 = vcvt.s32.f32 %v1036_v13  ;;  %v1037_v18 = vcvt.s32.f32 %v1035_v14  ;;  %v1053_v24 = vcvt.s32.f32 %v1051_v20 }
 0x6b4   : > { %v1070_v25 = vcvt.s32.f32 %v1068_v22  ;;  %v1069_v26 = vcvt.s32.f32 %v1067_v23 }
 0x6b5   : > { %1057 = vadd.xlane.f32.xlu2 %v1054_v16  ;;  %1041 = vadd.xlane.f32.xlu1 %v1038_v17 }
 0x6b6   : > { %1039 = vadd.xlane.f32.xlu0 %v1037_v18 }
 0x6bd   : > { %1055 = vadd.xlane.f32.xlu2 %v1053_v24  ;;  %1073 = vadd.xlane.f32.xlu1 %v1070_v25 }
 0x6be   : > { %1071 = vadd.xlane.f32.xlu0 %v1069_v26 }
 0x728   : > { %v1058_v27 = vpop.xlane.xlu2 %1057  ;;  %v1042_v28 = vpop.xlane.xlu1 %1041 }
 0x729   : > { %v1044_v29 = vcvt.f32.s32 %v1042_v28  ;;  %v1040_v30 = vpop.xlane.xlu0 %1039  ;;  %v1060_v33 = vcvt.f32.s32 %v1058_v27 }
 0x72a   : > { %v1043_v32 = vcvt.f32.s32 %v1040_v30 }
 0x72b   : > { %v1045_v31 = vshll.u32 %v1044_v29, 16  ;;  %v1061_v40 = vshll.u32 %v1060_v33, 16 }
 0x72d   : > { %v1046_v34 = vadd.s32 %v1045_v31, %v1043_v32 }
 0x72f   : > { %vm1047_vm5 = vcmp.ge.s32.totalorder %v1046_v34, %v1975_v21 }
 0x730   : > { %v1056_v35 = vpop.xlane.xlu2 %1055  ;;  %v1074_v37 = vpop.xlane.xlu1 %1073  ;;  %v1080_v47 = vsel %vm1047_vm5, %v1029_v5, %v1028_v1 }
 0x731   : > { %v1059_v41 = vcvt.f32.s32 %v1056_v35  ;;  %v1076_v42 = vcvt.f32.s32 %v1074_v37  ;;  %v1072_v43 = vpop.xlane.xlu0 %1071 }
 0x732   : > { %v1075_v46 = vcvt.f32.s32 %v1072_v43 }
 0x733   : > { %v1062_v44 = vadd.s32 %v1061_v40, %v1059_v41  ;;  %v1077_v45 = vshll.u32 %v1076_v42, 16 }
 0x735   : > { %vm1063_vm6 = vcmp.ge.s32.totalorder %v1062_v44, %v1975_v21  ;;  %v1078_v48 = vadd.s32 %v1077_v45, %v1075_v46 }
 0x736   : > { %v1081_v49 = vsel %vm1063_vm6, %v1030_v4, %v1080_v47 }
 0x737   : > { %vm1079_vm7 = vcmp.ge.s32.totalorder %v1078_v48, %v1975_v21 }
 0x738   : > { %v1082_v50 = vsel %vm1079_vm7, %v1031_v6, %v1081_v49 }
 0x739   : > { %v1084_v51 = vor.u32 64, %v1082_v50  ;;  %v1083_v52 = vor.u32 32, %v1082_v50  ;;  %v1085_v53 = vor.u32 96, %v1082_v50 }
 0x73b   : > { %vm1102_vm8 = vcmp.ge.s32.totalorder %v1959_v38, %v1084_v51  ;;  %vm1086_vm9 = vcmp.ge.s32.totalorder %v1959_v38, %v1083_v52  ;;  %vm1118_vm10 = vcmp.ge.s32.totalorder %v1959_v38, %v1085_v53 }
 0x73c   : > { %v1103_v54 = vsel %vm1102_vm8, 1, %v1733_v39  ;;  %v1087_v55 = vsel %vm1086_vm9, 1, %v1733_v39  ;;  %v1119_v62 = vsel %vm1118_vm10, 1, %v1733_v39 }
 0x73d   : > { %v1104_v56 = vsel %vm389_vm1, %v1103_v54, 0  ;;  %v1088_v57 = vsel %vm389_vm1, %v1087_v55, 0  ;;  %v1120_v5 = vsel %vm389_vm1, %v1119_v62, 0 }
 0x73e   : > { %v1106_v59 = vshrl.u32 %v1104_v56, 16  ;;  %v1090_v60 = vshrl.u32 %v1088_v57, 16  ;;  %v1089_v61 = vand.u32 65535, %v1088_v57  ;;  %v1105_v6 = vand.u32 65535, %v1104_v56 }
 0x73f   : > { %v1122_v7 = vshrl.u32 %v1120_v5, 16  ;;  %v1121_v8 = vand.u32 65535, %v1120_v5 }
 0x740   : > { %v1108_v63 = vcvt.s32.f32 %v1106_v59  ;;  %v1092_v1 = vcvt.s32.f32 %v1090_v60  ;;  %v1091_v4 = vcvt.s32.f32 %v1089_v61  ;;  %v1107_v10 = vcvt.s32.f32 %v1105_v6 }
 0x741   : > { %v1124_v11 = vcvt.s32.f32 %v1122_v7  ;;  %v1123_v12 = vcvt.s32.f32 %v1121_v8 }
 0x742   : > { %1111 = vadd.xlane.f32.xlu2 %v1108_v63  ;;  %1095 = vadd.xlane.f32.xlu1 %v1092_v1 }
 0x743   : > { %1093 = vadd.xlane.f32.xlu0 %v1091_v4 }
 0x74a   : > { %1109 = vadd.xlane.f32.xlu2 %v1107_v10  ;;  %1127 = vadd.xlane.f32.xlu1 %v1124_v11 }
 0x74b   : > { %1125 = vadd.xlane.f32.xlu0 %v1123_v12 }
 0x7b5   : > { %v1112_v13 = vpop.xlane.xlu2 %1111  ;;  %v1096_v14 = vpop.xlane.xlu1 %1095 }
 0x7b6   : > { %v1098_v15 = vcvt.f32.s32 %v1096_v14  ;;  %v1094_v16 = vpop.xlane.xlu0 %1093  ;;  %v1114_v19 = vcvt.f32.s32 %v1112_v13 }
 0x7b7   : > { %v1097_v18 = vcvt.f32.s32 %v1094_v16 }
 0x7b8   : > { %v1099_v17 = vshll.u32 %v1098_v15, 16  ;;  %v1115_v24 = vshll.u32 %v1114_v19, 16 }
 0x7ba   : > { %v1100_v20 = vadd.s32 %v1099_v17, %v1097_v18 }
 0x7bc   : > { %vm1101_vm11 = vcmp.ge.s32.totalorder %v1100_v20, %v1975_v21 }
 0x7bd   : > { %v1110_v22 = vpop.xlane.xlu2 %1109  ;;  %v1128_v23 = vpop.xlane.xlu1 %1127  ;;  %v1134_v31 = vsel %vm1101_vm11, %v1083_v52, %v1082_v50 }
 0x7be   : > { %v1113_v25 = vcvt.f32.s32 %v1110_v22  ;;  %v1130_v26 = vcvt.f32.s32 %v1128_v23  ;;  %v1126_v27 = vpop.xlane.xlu0 %1125 }
 0x7bf   : > { %v1129_v30 = vcvt.f32.s32 %v1126_v27 }
 0x7c0   : > { %v1116_v28 = vadd.s32 %v1115_v24, %v1113_v25  ;;  %v1131_v29 = vshll.u32 %v1130_v26, 16 }
 0x7c2   : > { %vm1117_vm12 = vcmp.ge.s32.totalorder %v1116_v28, %v1975_v21  ;;  %v1132_v32 = vadd.s32 %v1131_v29, %v1129_v30 }
 0x7c3   : > { %v1135_v33 = vsel %vm1117_vm12, %v1084_v51, %v1134_v31 }
 0x7c4   : > { %vm1133_vm13 = vcmp.ge.s32.totalorder %v1132_v32, %v1975_v21 }
 0x7c5   : > { %v1136_v34 = vsel %vm1133_vm13, %v1085_v53, %v1135_v33 }
 0x7c6   : > { %v1138_v35 = vor.u32 16, %v1136_v34  ;;  %v1137_v37 = vor.u32 8, %v1136_v34  ;;  %v1139_v40 = vor.u32 24, %v1136_v34 }
 0x7c8   : > { %vm1156_vm14 = vcmp.ge.s32.totalorder %v1959_v38, %v1138_v35  ;;  %vm1140_vm15 = vcmp.ge.s32.totalorder %v1959_v38, %v1137_v37  ;;  %vm1172_vm0 = vcmp.ge.s32.totalorder %v1959_v38, %v1139_v40 }
 0x7c9   : > { %v1157_v41 = vsel %vm1156_vm14, 1, %v1733_v39  ;;  %v1141_v42 = vsel %vm1140_vm15, 1, %v1733_v39  ;;  %v1173_v48 = vsel %vm1172_vm0, 1, %v1733_v39  ;;  %vm380_vm14 = vcmask 1043456  }
 0x7ca   : > { %v1158_v43 = vsel %vm389_vm1, %v1157_v41, 0  ;;  %v1142_v44 = vsel %vm389_vm1, %v1141_v42, 0  ;;  %v1174_v52 = vsel %vm389_vm1, %v1173_v48, 0  ;;  %vm1278_vm0 = vcmp.gt.s32.totalorder %v1975_v21, 0 }
 0x7cb   : > { %v1160_v45 = vshrl.u32 %v1158_v43, 16  ;;  %v1144_v46 = vshrl.u32 %v1142_v44, 16  ;;  %v1143_v47 = vand.u32 65535, %v1142_v44  ;;  %v1159_v53 = vand.u32 65535, %v1158_v43 }
 0x7cc   : > { %v1176_v54 = vshrl.u32 %v1174_v52, 16  ;;  %v1175_v55 = vand.u32 65535, %v1174_v52 }
 0x7cd   : > { %v1162_v49 = vcvt.s32.f32 %v1160_v45  ;;  %v1146_v50 = vcvt.s32.f32 %v1144_v46  ;;  %v1145_v51 = vcvt.s32.f32 %v1143_v47  ;;  %v1161_v56 = vcvt.s32.f32 %v1159_v53 }
 0x7ce   : > { %v1178_v57 = vcvt.s32.f32 %v1176_v54  ;;  %v1177_v59 = vcvt.s32.f32 %v1175_v55 }
 0x7cf   : > { %1165 = vadd.xlane.f32.xlu2 %v1162_v49  ;;  %1149 = vadd.xlane.f32.xlu1 %v1146_v50 }
 0x7d0   : > { %1147 = vadd.xlane.f32.xlu0 %v1145_v51 }
 0x7d7   : > { %1163 = vadd.xlane.f32.xlu2 %v1161_v56  ;;  %1181 = vadd.xlane.f32.xlu1 %v1178_v57 }
 0x7d8   : > { %1179 = vadd.xlane.f32.xlu0 %v1177_v59 }
 0x842   : > { %v1166_v60 = vpop.xlane.xlu2 %1165  ;;  %v1150_v61 = vpop.xlane.xlu1 %1149 }
 0x843   : > { %v1152_v62 = vcvt.f32.s32 %v1150_v61  ;;  %v1148_v63 = vpop.xlane.xlu0 %1147  ;;  %v1168_v5 = vcvt.f32.s32 %v1166_v60 }
 0x844   : > { %v1151_v4 = vcvt.f32.s32 %v1148_v63 }
 0x845   : > { %v1153_v1 = vshll.u32 %v1152_v62, 16  ;;  %v1169_v10 = vshll.u32 %v1168_v5, 16 }
 0x847   : > { %v1154_v6 = vadd.s32 %v1153_v1, %v1151_v4 }
 0x849   : > { %vm1155_vm3 = vcmp.ge.s32.totalorder %v1154_v6, %v1975_v21 }
 0x84a   : > { %v1164_v7 = vpop.xlane.xlu2 %1163  ;;  %v1182_v8 = vpop.xlane.xlu1 %1181  ;;  %v1188_v17 = vsel %vm1155_vm3, %v1137_v37, %v1136_v34 }
 0x84b   : > { %v1167_v11 = vcvt.f32.s32 %v1164_v7  ;;  %v1184_v12 = vcvt.f32.s32 %v1182_v8  ;;  %v1180_v13 = vpop.xlane.xlu0 %1179 }
 0x84c   : > { %v1183_v16 = vcvt.f32.s32 %v1180_v13 }
 0x84d   : > { %v1170_v14 = vadd.s32 %v1169_v10, %v1167_v11  ;;  %v1185_v15 = vshll.u32 %v1184_v12, 16 }
 0x84f   : > { %vm1171_vm4 = vcmp.ge.s32.totalorder %v1170_v14, %v1975_v21  ;;  %v1186_v18 = vadd.s32 %v1185_v15, %v1183_v16  ;;  %v371_v15 = vld [vmem:[%s1915_s20] sm:$0xf]  ;;  %v372_v16 = vld [vmem:[%s1922_s24] sm:$0xf] }
 0x850   : > { %v1189_v19 = vsel %vm1171_vm4, %v1138_v35, %v1188_v17  ;;  %v373_v17 = vsub.f32 %v371_v15, %v372_v16  ;;  %vm1293_vm4 = vcmask 16384  }
 0x851   : > { %vm1187_vm5 = vcmp.ge.s32.totalorder %v1186_v18, %v1975_v21 }
 0x852   : > { %v1190_v20 = vsel %vm1187_vm5, %v1139_v40, %v1189_v19  ;;  %v374_v18 = vand.u32 2147483647, %v373_v17  ;;  %v376_v19 = vmul.f32 0.5, %v373_v17 }
 0x853   : > { %v1192_v22 = vor.u32 4, %v1190_v20  ;;  %v1191_v23 = vor.u32 2, %v1190_v20  ;;  %v1193_v24 = vor.u32 6, %v1190_v20 }
 0x854   : > { %vm375_vm13 = vcmp.lt.f32.partialorder %v374_v18, 1.0 }
 0x855   : > { %vm1210_vm6 = vcmp.ge.s32.totalorder %v1959_v38, %v1192_v22  ;;  %vm1194_vm7 = vcmp.ge.s32.totalorder %v1959_v38, %v1191_v23  ;;  %vm1226_vm8 = vcmp.ge.s32.totalorder %v1959_v38, %v1193_v24 }
 0x856   : > { %v1211_v25 = vsel %vm1210_vm6, 1, %v1733_v39  ;;  %v1195_v26 = vsel %vm1194_vm7, 1, %v1733_v39  ;;  %v1227_v32 = vsel %vm1226_vm8, 1, %v1733_v39 }
 0x857   : > { %v1212_v27 = vsel %vm389_vm1, %v1211_v25, 0  ;;  %v1196_v28 = vsel %vm389_vm1, %v1195_v26, 0  ;;  %v1228_v37 = vsel %vm389_vm1, %v1227_v32, 0 }
 0x858   : > { %v1214_v29 = vshrl.u32 %v1212_v27, 16  ;;  %v1198_v30 = vshrl.u32 %v1196_v28, 16  ;;  %v1197_v31 = vand.u32 65535, %v1196_v28  ;;  %v1213_v40 = vand.u32 65535, %v1212_v27 }
 0x859   : > { %v1230_v41 = vshrl.u32 %v1228_v37, 16  ;;  %v1229_v42 = vand.u32 65535, %v1228_v37 }
 0x85a   : > { %v1216_v33 = vcvt.s32.f32 %v1214_v29  ;;  %v1200_v34 = vcvt.s32.f32 %v1198_v30  ;;  %v1199_v35 = vcvt.s32.f32 %v1197_v31  ;;  %v1215_v43 = vcvt.s32.f32 %v1213_v40 }
 0x85b   : > { %v1232_v44 = vcvt.s32.f32 %v1230_v41  ;;  %v1231_v45 = vcvt.s32.f32 %v1229_v42 }
 0x85c   : > { %1219 = vadd.xlane.f32.xlu2 %v1216_v33  ;;  %1203 = vadd.xlane.f32.xlu1 %v1200_v34 }
 0x85d   : > { %1201 = vadd.xlane.f32.xlu0 %v1199_v35 }
 0x864   : > { %1217 = vadd.xlane.f32.xlu2 %v1215_v43  ;;  %1235 = vadd.xlane.f32.xlu1 %v1232_v44 }
 0x865   : > { %1233 = vadd.xlane.f32.xlu0 %v1231_v45 }
 0x8cf   : > { %v1220_v46 = vpop.xlane.xlu2 %1219  ;;  %v1204_v47 = vpop.xlane.xlu1 %1203 }
 0x8d0   : > { %v1206_v48 = vcvt.f32.s32 %v1204_v47  ;;  %v1202_v49 = vpop.xlane.xlu0 %1201  ;;  %v1222_v52 = vcvt.f32.s32 %v1220_v46  ;;  %v1274_v46 = vcvt.s32.f32 %v1975_v21 }
 0x8d1   : > { %v1205_v51 = vcvt.f32.s32 %v1202_v49 }
 0x8d2   : > { %v1207_v50 = vshll.u32 %v1206_v48, 16  ;;  %v1223_v56 = vshll.u32 %v1222_v52, 16 }
 0x8d4   : > { %v1208_v53 = vadd.s32 %v1207_v50, %v1205_v51 }
 0x8d6   : > { %vm1209_vm9 = vcmp.ge.s32.totalorder %v1208_v53, %v1975_v21 }
 0x8d7   : > { %v1218_v54 = vpop.xlane.xlu2 %1217  ;;  %v1236_v55 = vpop.xlane.xlu1 %1235  ;;  %v1242_v1 = vsel %vm1209_vm9, %v1191_v23, %v1190_v20  ;;  %v377_v20 = vmul.f32 %v376_v19, %v373_v17 }
 0x8d8   : > { %v1221_v57 = vcvt.f32.s32 %v1218_v54  ;;  %v1238_v59 = vcvt.f32.s32 %v1236_v55  ;;  %v1234_v60 = vpop.xlane.xlu0 %1233 }
 0x8d9   : > { %v1237_v63 = vcvt.f32.s32 %v1234_v60 }
 0x8da   : > { %v1224_v61 = vadd.s32 %v1223_v56, %v1221_v57  ;;  %v1239_v62 = vshll.u32 %v1238_v59, 16 }
 0x8dc   : > { %vm1225_vm10 = vcmp.ge.s32.totalorder %v1224_v61, %v1975_v21  ;;  %v1240_v4 = vadd.s32 %v1239_v62, %v1237_v63 }
 0x8dd   : > { %v1243_v5 = vsel %vm1225_vm10, %v1192_v22, %v1242_v1  ;;  %v1459_v22 = vadd.f32 -0.5, %v374_v18 }
 0x8de   : > { %vm1241_vm11 = vcmp.ge.s32.totalorder %v1240_v4, %v1975_v21 }
 0x8df   : > { %v1244_v6 = vsel %vm1241_vm11, %v1193_v24, %v1243_v5  ;;  %v379_v24 = vsel %vm375_vm13, %v377_v20, %v1459_v22 }
 0x8e0   : > { %v1245_v7 = vor.u32 1, %v1244_v6  ;;  %v381_v25 = vsel %vm380_vm14, %v379_v24, 0.0 }
 0x8e1   : > { %v382_v26 = vrot.slane %v381_v25, 4 }
 0x8e2   : > { %vm1246_vm12 = vcmp.ge.s32.totalorder %v1959_v38, %v1245_v7 }
 0x8e3   : > { %v1247_v8 = vsel %vm1246_vm12, 1, %v1733_v39  ;;  %v1280_v39 = vsel %vm368_vm2, %v1954_v36, 0.0  ;;  %v383_v27 = vadd.f32 %v382_v26, %v381_v25 }
 0x8e4   : > { %v1248_v10 = vsel %vm389_vm1, %v1247_v8, 0  ;;  %v1281_v23 = vsel %vm389_vm1, %v1280_v39, 0.0 }
 0x8e5   : > { %v1250_v11 = vshrl.u32 %v1248_v10, 16  ;;  %v1249_v12 = vand.u32 65535, %v1248_v10  ;;  %v384_v28 = vrot.slane %v383_v27, 2 }
 0x8e7   : > { %v1252_v13 = vcvt.s32.f32 %v1250_v11  ;;  %v1251_v14 = vcvt.s32.f32 %v1249_v12  ;;  %v385_v31 = vadd.f32 %v384_v28, %v383_v27 }
 0x8e9   : > { %1255 = vadd.xlane.f32.xlu1 %v1252_v13  ;;  %1253 = vadd.xlane.f32.xlu2 %v1251_v14  ;;  %v386_v35 = vrot.slane %v385_v31, 1 }
 0x8eb   : > { %v387_v36 = vadd.f32 %v386_v35, %v385_v31 }
 0x8ed   : > { %v388_v44 = vmul.f32 %v1946_v3, %v387_v36 }
 0x8ef   : > { %v390_v45 = vsel %vm389_vm1, %v388_v44, 0.0 }
 0x8f1   : > { %1282 = vadd.xlane.f32.xlu2 %v1281_v23 }
 0x95c   : > { %v1256_v29 = vpop.xlane.xlu1 %1255  ;;  %v1254_v30 = vpop.xlane.xlu2 %1253 }
 0x95d   : > { %v1258_v32 = vcvt.f32.s32 %v1256_v29  ;;  %v1257_v34 = vcvt.f32.s32 %v1254_v30 }
 0x95f   : > { %v1259_v33 = vshll.u32 %v1258_v32, 16 }
 0x961   : > { %v1260_v37 = vadd.s32 %v1259_v33, %v1257_v34 }
 0x963   : > { %vm1261_vm15 = vcmp.ge.s32.totalorder %v1260_v37, %v1975_v21 }
 0x964   : > { %v1262_v0 = vsel %vm1261_vm15, %v1245_v7, %v1244_v6  ;;  %v1283_v51 = vpop.xlane.xlu2 %1282 }
 0x965   : > { %vm1264_vm2 = vcmp.gt.f32.partialorder %v1959_v38, %v1262_v0 }
 0x966   : > { %v1460_v40 = vsel %vm1264_vm2, 1.0, %v1732_v2  ;;  %v1265_v41 = vsel %vm1264_vm2, %v1959_v38, 0.0  ;;  %v1288_v2 = vand.u32 127, %v415_v9 }
 0x967   : > { %v1271_v42 = vsel %vm389_vm1, %v1460_v40, 0.0  ;;  %v1266_v43 = vsel %vm389_vm1, %v1265_v41, 0.0 }
 0x968   : > { %1272 = vadd.xlane.f32.xlu0 %v1271_v42  ;;  %1267 = vadd.xlane.f32.xlu1 %v1266_v43  ;;  %vm1290_vm1 = vcmp.eq.s32.totalorder %v1288_v2, 1  ;;  %vm1289_vm3 = vcmp.eq.s32.totalorder %v1288_v2, 0 }
 0x970   : > { %391 = vadd.xlane.f32.xlu0 %v390_v45 }
 0x9db   : > { %v1273_v47 = vpop.xlane.xlu0 %1272  ;;  %v1268_v38 = vpop.xlane.xlu1 %1267 }
 0x9dc   : > { %v1275_v48 = vsub.f32 %v1274_v46, %v1273_v47 }
 0x9de   : > { %v1276_v49 = vmul.f32 %v1275_v48, %v1262_v0 }
 0x9e0   : > { %v1277_v50 = vadd.f32 %v1276_v49, %v1268_v38 }
 0x9e2   : > { %v1279_v3 = vsel %vm1278_vm0, %v1277_v50, 0.0 }
 0x9e3   : > { %v1284_v52 = vadd.f32 %v1283_v51, %v1279_v3  ;;  %v392_v53 = vpop.xlane.xlu0 %391 }
 0x9e5   : > { %v1291_v9 = vsel %vm1290_vm1, %v1284_v52, %v1970_v58 }
 0x9e6   : > { %v1292_v54 = vsel %vm1289_vm3, %v392_v53, %v1291_v9 }
 0x9e7   : > { %1294 = vst.msk [vmem:[%s361_s17] sm:$0x1] %vm1293_vm4, %v1292_v54 }
 0x9e8   : > { %1683 = shalt.err (!%p1680_p0)
}
 0x9e9   : > { %1476 = dma.vmem_to_hbm [thread:$0]  (%p1810_p11), %s1307_s16, 16, %s1309_s1, %s1296_s22  }
 0x9ea PF: > { %s1320_s26 = sand.u32 1, %s1718_s18   ;;  %p1492_p8 = pnand %p1447_p9, %p1814_p12 }
 0x9eb   : > { %s1321_s11 = scalar_lea.sflag [#allocation4], %s1320_s26 }
 0x9ec   : > { %p1493_p10 = pneg %p1492_p8 }
 0x9ee   : > { %1713 = dma.done.wait (%p1493_p10), %s1321_s11, 16  }
 0x9ef   : > { %1715 = vsyncadd (%p1493_p10), %s1321_s11, 4294967280  ;;  %s2226_s21 = sld [smem:[#allocation16_spill]]  ;;  %s2229_s18 = smov %s1722_s19 }
 0x9f0   : > { %s2227_s8 = sld [smem:[#allocation15_spill]] }
 0x9f1   : > { %s2228_s20 = sld [smem:[#allocation17_spill]] }
 0x9f5   : > { %p24_p1 = scmp.ge.s32.totalorder %s2226_s21, 4  }
 0x9f6   : > { %s2230_s19 = smov %s2227_s8 }
 0x9f7   :  { %26 = sbr.rel (!%p24_p1) target bundleno = 11 (0xb), region = 125 }
 0x9fc   :  { %1326 = vsyncpa [#allocation3], 1 }
 0x9fd   :  { %1328 = vsyncpa [#allocation3 + $0x1], 1 }
 0x9fe   :  { %1329 = vsyncpa [#allocation6], 1 }
 0x9ff   :  { %1331 = vsyncpa [#allocation6 + $0x1], 1 }
 0xa00   :  { %1332 = vsyncpa [#allocation9], 1 }
 0xa01   :  { %1334 = vsyncpa [#allocation9 + $0x1], 1 }
 0xa02   :  { %1335 = vsyncpa [#allocation4], 1 }
 0xa03   :  { %1337 = vsyncpa [#allocation4 + $0x1], 1 }

</bundles_post_ra>
